<compile_context>
chip_gen: v6e
topology: v6e:2x2x1
jax: 0.10.0
libtpu: 0.0.40
codegen_flags: <defaults>
</compile_context>

<pallas_src>
import functools
from typing import NamedTuple

import numpy as np
import jax
import jax.numpy as jnp
from jax import lax
from jax.experimental import pallas as pl
from jax.experimental.pallas import tpu as pltpu

EPS = 1e-5


def _full_spec(shape):
    # Tiny model: every operand is one full-array VMEM block
    # (block_shape == full array shape satisfies the (8,128) rule).
    zeros = (0,) * len(shape)
    return pl.BlockSpec(shape, lambda i, _z=zeros: _z)


# ----------------------------- geometry helper ------------------------------

class _Geometry(NamedTuple):
    s: int
    a_h: int
    a_w: int
    ho: int
    wo: int
    hq: int
    wq: int
    m: int       # encoder/pointwise pixel count (N*Ho*Wo)
    m2: int      # ConvTranspose macro-pixel count (N*Hq*Wq)
    npix: int    # lane count of the repacked input (N*(H/s)*(W/s))
    lane: int    # common padded lane width (multiple of 128)


def _geometry(cfg, x_shape):
    n, _cin, h, w = x_shape
    k = cfg.kernel_size
    s = k // 2
    assert k == 2 * s and h % s == 0 and w % s == 0, \
        "sub-pixel lowering assumes kernel_size == 2*stride and stride-aligned input"
    a_h, a_w = h // s, w // s
    ho, wo = a_h - 1, a_w - 1          # (H - k)//s + 1
    hq, wq = a_h, a_w                  # ConvTranspose output macro-grid
    m = n * ho * wo
    m2 = n * hq * wq
    npix = n * a_h * a_w
    lane = ((max(m, m2, npix) + 127) // 128) * 128
    return _Geometry(s, a_h, a_w, ho, wo, hq, wq, m, m2, npix, lane)


# ----------------------------- Pallas kernel --------------------------------

def _make_fused_kernel(n_layers: int, n_enc: int, c_emb: int, m_valid: int, n_taps: int):
    """Whole ConvAutoEncoder forward on channel-major (C, LANE) activations.

    refs = [x_lane, R_enc, W0_taps, b0,  (w, p) * n_layers,  P_dec, WT_taps, bT,  out]
    out rows: [0:c_emb] = embedding (post last encoder BN), [c_emb:] = sub-pixel reconstruction.
    """

    def kernel(*refs):
        x_ref, r_ref, w0_ref, b0_ref = refs[:4]
        layer_refs = refs[4:4 + 2 * n_layers]
        pdec_ref = refs[4 + 2 * n_layers]
        wt_ref = refs[5 + 2 * n_layers]
        bt_ref = refs[6 + 2 * n_layers]
        out_ref = refs[7 + 2 * n_layers]

        lane = out_ref.shape[1]
        col = lax.broadcasted_iota(jnp.int32, (1, lane), 1)
        mask = (col < m_valid).astype(jnp.float32)      # valid pixel columns
        inv_m = 1.0 / float(m_valid)

        # ---- encoder strided conv via sub-pixel taps (selection matmuls) + bias + ReLU ----
        x = x_ref[...]                                   # (s*s*Cin, LANE)
        acc = None
        for t in range(n_taps):
            xt = jnp.dot(x, r_ref[t], preferred_element_type=jnp.float32)       # (s*s*Cin, LANE)
            term = jnp.dot(w0_ref[t], xt, preferred_element_type=jnp.float32)   # (C0, LANE)
            acc = term if acc is None else acc + term
        h = jnp.maximum(acc + b0_ref[...], 0.0)

        # ---- encoder + decoder pointwise stacks: 1x1 conv + ReLU + train-mode BN ----
        for li in range(n_layers):
            w = layer_refs[2 * li][...]                  # (Cout, Cin)
            p = layer_refs[2 * li + 1][...]              # (Cout, 3): cols = [bias, gamma, beta]
            y = jnp.dot(w, h, preferred_element_type=jnp.float32)
            y = jnp.maximum(y + p[:, 0:1], 0.0)
            ym = y * mask
            mean = jnp.sum(ym, axis=1, keepdims=True) * inv_m          # exact batch mean
            d = (y - mean) * mask
            var = jnp.sum(d * d, axis=1, keepdims=True) * inv_m        # biased batch variance
            h = d * lax.rsqrt(var + EPS) * p[:, 1:2] + p[:, 2:3]
            if li == n_enc - 1:
                out_ref[0:c_emb, :] = h                  # embedding (padded cols sliced outside)

        # ---- decoder ConvTranspose2d via sub-pixel taps + bias + ReLU ----
        rec = None
        for t in range(n_taps):
            ht = jnp.dot(h, pdec_ref[t], preferred_element_type=jnp.float32)     # (Cd, LANE)
            term = jnp.dot(wt_ref[t], ht, preferred_element_type=jnp.float32)    # (s*s*Co, LANE)
            rec = term if rec is None else rec + term
        out_ref[c_emb:, :] = jnp.maximum(rec + bt_ref[...], 0.0)

    return kernel


# --------------------------- pallas_call wrapper -----------------------------

def _fused_call(x_lane, packed, cfg, geo: _Geometry):
    n_enc = cfg.hidden_layers + 1
    n_layers = 2 * n_enc
    cf = cfg.final_channels
    ssco = geo.s * geo.s * cfg.input_channels
    lane = geo.lane
    out_rows = cf + ssco

    args = [x_lane, packed["R"], packed["w0_taps"], packed["b0"]]
    for w, p in zip(packed["pw_w"], packed["pw_p"]):
        args += [w, p]
    args += [packed["P"], packed["wT_taps"], packed["bT"]]

    in_specs = [_full_spec(tuple(a.shape)) for a in args]
    out_shape = jax.ShapeDtypeStruct((out_rows, lane), jnp.float32)

    # advisory cost estimate (matmul-dominated)
    sscin = int(packed["w0_taps"].shape[2])
    c0 = int(packed["w0_taps"].shape[1])
    cd = int(packed["wT_taps"].shape[2])
    flops = 4 * 2 * (sscin * lane * lane + c0 * sscin * lane)
    flops += 4 * 2 * (cd * lane * lane + ssco * cd * lane)
    transc = 0
    for w in packed["pw_w"]:
        cout, cin = int(w.shape[0]), int(w.shape[1])
        flops += 2 * cin * cout * lane + 8 * cout * lane
        transc += cout
    bytes_accessed = sum(int(a.size) * a.dtype.itemsize for a in args) + out_rows * lane * 4
    cost = pl.CostEstimate(flops=int(flops), transcendentals=int(max(transc, 1)),
                           bytes_accessed=int(bytes_accessed))

    return pl.pallas_call(
        _make_fused_kernel(n_layers, n_enc, cf, geo.m, n_taps=4),
        out_shape=out_shape,
        grid=(1,),
        in_specs=in_specs,
        out_specs=_full_spec((out_rows, lane)),
        compiler_params=pltpu.CompilerParams(
            dimension_semantics=("arbitrary",),
            vmem_limit_bytes=32 * 1024 * 1024),
        cost_estimate=cost,
    )(*args)


# --------------------------- Model definition ------------------------------

class PatchConvAutoEncoderParameters(NamedTuple):
    kernel_size: int
    hidden_layers: int
    initial_channels: int
    final_channels: int
    input_channels: int = 3


def _conv_init(key, cout, cin, k):
    k1, k2 = jax.random.split(key)
    bound = 1.0 / jnp.sqrt(jnp.float32(cin * k * k))
    w = jax.random.uniform(k1, (cout, cin, k, k), jnp.float32, -bound, bound)
    b = jax.random.uniform(k2, (cout,), jnp.float32, -bound, bound)
    return w, b


def _bn_init(key, c):
    k1, k2 = jax.random.split(key)
    gamma = 1.0 + 0.1 * jax.random.normal(k1, (c,), jnp.float32)
    beta = 0.1 * jax.random.normal(k2, (c,), jnp.float32)
    return gamma, beta


def init_autoencoder_params(key, cfg: PatchConvAutoEncoderParameters):
    k = cfg.kernel_size
    keys = iter(jax.random.split(key, 64))
    params = {}

    # encoder: Conv2d(input -> initial, k, stride=k//2) + ReLU
    params["enc_conv_w"], params["enc_conv_b"] = _conv_init(
        next(keys), cfg.initial_channels, cfg.input_channels, k)

    # encoder 1x1 stack
    enc_pw = []
    last = cfg.initial_channels
    for _ in range(cfg.hidden_layers + 1):
        w, b = _conv_init(next(keys), cfg.final_channels, last, 1)
        g, bt = _bn_init(next(keys), cfg.final_channels)
        enc_pw.append((w[:, :, 0, 0], b, g, bt))
        last = cfg.final_channels
    params["enc_pw"] = enc_pw

    # decoder 1x1 stack
    dec_pw = []
    for i in range(cfg.hidden_layers + 1, 0, -1):
        cout = cfg.initial_channels if i == 1 else cfg.final_channels
        w, b = _conv_init(next(keys), cout, cfg.final_channels, 1)
        g, bt = _bn_init(next(keys), cout)
        dec_pw.append((w[:, :, 0, 0], b, g, bt))
    params["dec_pw"] = dec_pw

    # decoder: ConvTranspose2d(initial -> input, k, stride=k//2) + ReLU
    kt1, kt2 = jax.random.split(next(keys))
    bound = 1.0 / jnp.sqrt(jnp.float32(cfg.initial_channels * k * k))
    params["dec_convT_w"] = jax.random.uniform(
        kt1, (cfg.initial_channels, cfg.input_channels, k, k), jnp.float32, -bound, bound)
    params["dec_convT_b"] = jax.random.uniform(
        kt2, (cfg.input_channels,), jnp.float32, -bound, bound)
    return params


def pack_params(params, cfg: PatchConvAutoEncoderParameters, x_shape):
    """One-time conversion of torch-layout params into channel-major matmul tiles plus the
    static 0/1 column-selection matrices for the strided-conv / ConvTranspose tap lowering."""
    n, cin, h, w = x_shape
    geo = _geometry(cfg, x_shape)
    s, a_h, a_w = geo.s, geo.a_h, geo.a_w
    ho, wo, hq, wq, lane = geo.ho, geo.wo, geo.hq, geo.wq, geo.lane
    taps = [(0, 0), (0, 1), (1, 0), (1, 1)]

    packed = {}

    # encoder strided conv: rows of x_lane are (ry, rx, ci); h0 = sum_t W0_t @ (x_lane @ R_t)
    w0 = params["enc_conv_w"]                                   # (C0, Cin, k, k)
    c0 = w0.shape[0]
    w0_r = w0.reshape(c0, cin, 2, s, 2, s)                      # (co, ci, db, ry, dbx, rx)
    packed["w0_taps"] = jnp.transpose(w0_r, (2, 4, 0, 3, 5, 1)).reshape(4, c0, s * s * cin)
    packed["b0"] = params["enc_conv_b"].reshape(c0, 1)

    R = np.zeros((4, lane, lane), np.float32)
    for ti, (db, dbx) in enumerate(taps):
        for bn in range(n):
            for oy in range(ho):
                for ox in range(wo):
                    src = bn * a_h * a_w + (oy + db) * a_w + (ox + dbx)
                    dst = bn * ho * wo + oy * wo + ox
                    R[ti, src, dst] = 1.0
    packed["R"] = jnp.asarray(R)

    # pointwise layers: W (Cout, Cin), params packed as (Cout, 3) = [bias, gamma, beta]
    packed["pw_w"], packed["pw_p"] = [], []
    for (pw, b, g, bt) in list(params["enc_pw"]) + list(params["dec_pw"]):
        packed["pw_w"].append(pw)                               # (Cout, Cin)
        packed["pw_p"].append(jnp.stack([b, g, bt], axis=1))    # (Cout, 3)

    # ConvTranspose2d as 2x2 sub-pixel taps over the (padded) decoder map:
    # rec[(ry,rx,co), (n,qy,qx)] = b[co] + sum_{ty,tx,ci} W[ci,co,s(1-ty)+ry,s(1-tx)+rx]
    #                                       * h_dec[ci, (n, qy+ty-1, qx+tx-1)]   (0 if OOB)
    wT = params["dec_convT_w"]                                  # (Cd, Co, k, k) torch layout
    cd, co = wT.shape[0], wT.shape[1]
    w6 = jnp.flip(wT.reshape(cd, co, 2, s, 2, s), axis=(2, 4))  # (ci, co, ty, ry, tx, rx)
    packed["wT_taps"] = jnp.transpose(w6, (2, 4, 3, 5, 1, 0)).reshape(4, s * s * co, cd)
    packed["bT"] = jnp.tile(params["dec_convT_b"], (s * s,)).reshape(s * s * co, 1)

    P = np.zeros((4, lane, lane), np.float32)
    for ti, (ty, tx) in enumerate(taps):
        for bn in range(n):
            for qy in range(hq):
                for qx in range(wq):
                    oy, ox = qy + ty - 1, qx + tx - 1
                    if 0 <= oy < ho and 0 <= ox < wo:
                        P[ti, bn * ho * wo + oy * wo + ox, bn * hq * wq + qy * wq + qx] = 1.0
    packed["P"] = jnp.asarray(P)
    return packed


def conv_autoencoder_forward(packed, x, cfg: PatchConvAutoEncoderParameters):
    n, cin, h, w = x.shape
    geo = _geometry(cfg, x.shape)
    s, a_h, a_w = geo.s, geo.a_h, geo.a_w
    ho, wo, hq, wq = geo.ho, geo.wo, geo.hq, geo.wq
    cf, co = cfg.final_channels, cfg.input_channels

    # repack input to channel-major, lane-dense: rows (ry, rx, ci), cols (n, a_y, a_x)
    x_lane = (x.reshape(n, cin, a_h, s, a_w, s)
               .transpose(3, 5, 1, 0, 2, 4)
               .reshape(s * s * cin, n * a_h * a_w))
    if geo.lane > geo.npix:
        x_lane = jnp.pad(x_lane, ((0, 0), (0, geo.lane - geo.npix)))

    out = _fused_call(x_lane, packed, cfg, geo)                 # (Cf + s*s*Co, LANE)

    # embedding: rows = channels, cols = (n, oy, ox)
    embedding = (out[:cf, :geo.m]
                 .reshape(cf, n, ho, wo)
                 .transpose(1, 0, 2, 3))                        # NCHW at the boundary

    # reconstruction: rows = (ry, rx, co), cols = (n, qy, qx); depth-to-space to NCHW
    rec_cm = out[cf:, :geo.m2]
    reconstructed = (rec_cm.reshape(s, s, co, n, hq, wq)
                     .transpose(3, 2, 4, 0, 5, 1)
                     .reshape(n, co, hq * s, wq * s))
    return embedding, reconstructed


# --------------------- plain-JAX reference (for self-check) ---------------------

def _reference_forward(params, x, cfg):
    s = cfg.kernel_size // 2
    dn = ("NCHW", "OIHW", "NCHW")

    def pw_bn(h, w, b, g, bt):
        y = jnp.einsum("nchw,oc->nohw", h, w) + b[None, :, None, None]
        y = jnp.maximum(y, 0.0)
        mean = jnp.mean(y, axis=(0, 2, 3), keepdims=True)
        var = jnp.mean(jnp.square(y - mean), axis=(0, 2, 3), keepdims=True)
        return (y - mean) * lax.rsqrt(var + EPS) * g[None, :, None, None] + bt[None, :, None, None]

    h = lax.conv_general_dilated(x, params["enc_conv_w"], (s, s), "VALID",
                                 dimension_numbers=dn)
    h = jnp.maximum(h + params["enc_conv_b"][None, :, None, None], 0.0)
    for (w, b, g, bt) in params["enc_pw"]:
        h = pw_bn(h, w, b, g, bt)
    emb = h
    for (w, b, g, bt) in params["dec_pw"]:
        h = pw_bn(h, w, b, g, bt)
    wT = params["dec_convT_w"]
    k = wT.shape[2]
    w_conv = jnp.flip(wT, (2, 3)).transpose(1, 0, 2, 3)
    rec = lax.conv_general_dilated(h, w_conv, (1, 1),
                                   padding=[(k - 1, k - 1), (k - 1, k - 1)],
                                   lhs_dilation=(s, s), dimension_numbers=dn)
    rec = jnp.maximum(rec + params["dec_convT_b"][None, :, None, None], 0.0)
    return emb, rec


# --------------------------------- main -------------------------------------

if __name__ == "__main__":
    cfg = PatchConvAutoEncoderParameters(
        kernel_size=4, hidden_layers=1,
        initial_channels=4, final_channels=8, input_channels=3)

    key = jax.random.PRNGKey(0)
    pkey, xkey = jax.random.split(key)
    params = init_autoencoder_params(pkey, cfg)
    x = jax.random.normal(xkey, (2, 3, 16, 16), jnp.float32)      # NCHW, like PyTorch
    packed = pack_params(params, cfg, x.shape)

    fwd = jax.jit(functools.partial(conv_autoencoder_forward, cfg=cfg))
    embedding, reconstructed = fwd(packed, x)
    jax.block_until_ready((embedding, reconstructed))

    # encoder: (16 - 4)//2 + 1 = 7 ;  decoder convT: (7 - 1)*2 + 4 = 16
    assert embedding.shape == (2, cfg.final_channels, 7, 7), embedding.shape
    assert reconstructed.shape == x.shape, reconstructed.shape
    assert jnp.all(jnp.isfinite(embedding)) and jnp.all(jnp.isfinite(reconstructed))

    # numerical self-check against a plain-JAX implementation of the PyTorch forward
    emb_ref, rec_ref = _reference_forward(params, x, cfg)
    assert jnp.allclose(embedding, emb_ref, rtol=1e-3, atol=1e-3), \
        float(jnp.max(jnp.abs(embedding - emb_ref)))
    assert jnp.allclose(reconstructed, rec_ref, rtol=1e-3, atol=1e-3), \
        float(jnp.max(jnp.abs(reconstructed - rec_ref)))

    print("KERNEL_OK")
</pallas_src>

<mosaic_0001>
module attributes {stable_mosaic.version = 11 : i64} {
  func.func @kernel(%arg0: i32, %arg1: memref<12x128xf32, #tpu.memory_space<vmem>>, %arg2: memref<4x128x128xf32, #tpu.memory_space<vmem>>, %arg3: memref<4x4x12xf32, #tpu.memory_space<vmem>>, %arg4: memref<4x1xf32, #tpu.memory_space<vmem>>, %arg5: memref<8x4xf32, #tpu.memory_space<vmem>>, %arg6: memref<8x3xf32, #tpu.memory_space<vmem>>, %arg7: memref<8x8xf32, #tpu.memory_space<vmem>>, %arg8: memref<8x3xf32, #tpu.memory_space<vmem>>, %arg9: memref<8x8xf32, #tpu.memory_space<vmem>>, %arg10: memref<8x3xf32, #tpu.memory_space<vmem>>, %arg11: memref<4x8xf32, #tpu.memory_space<vmem>>, %arg12: memref<4x3xf32, #tpu.memory_space<vmem>>, %arg13: memref<4x128x128xf32, #tpu.memory_space<vmem>>, %arg14: memref<4x12x4xf32, #tpu.memory_space<vmem>>, %arg15: memref<12x1xf32, #tpu.memory_space<vmem>>, %arg16: memref<20x128xf32, #tpu.memory_space<vmem>>) attributes {dimension_semantics = [#tpu.dimension_semantics<arbitrary>], iteration_bounds = array<i64: 1>, scalar_prefetch = 0 : i64, scratch_operands = 0 : i64, tpu.core_type = #tpu.core_type<tc>, window_params = [{pipeline_mode = #tpu.pipeline_mode<synchronous>, transform_indices = @transform_0, window_bounds = array<i64: 12, 128>}, {pipeline_mode = #tpu.pipeline_mode<synchronous>, transform_indices = @transform_1, window_bounds = array<i64: 4, 128, 128>}, {pipeline_mode = #tpu.pipeline_mode<synchronous>, transform_indices = @transform_2, window_bounds = array<i64: 4, 4, 12>}, {pipeline_mode = #tpu.pipeline_mode<synchronous>, transform_indices = @transform_3, window_bounds = array<i64: 4, 1>}, {pipeline_mode = #tpu.pipeline_mode<synchronous>, transform_indices = @transform_4, window_bounds = array<i64: 8, 4>}, {pipeline_mode = #tpu.pipeline_mode<synchronous>, transform_indices = @transform_5, window_bounds = array<i64: 8, 3>}, {pipeline_mode = #tpu.pipeline_mode<synchronous>, transform_indices = @transform_6, window_bounds = array<i64: 8, 8>}, {pipeline_mode = #tpu.pipeline_mode<synchronous>, transform_indices = @transform_7, window_bounds = array<i64: 8, 3>}, {pipeline_mode = #tpu.pipeline_mode<synchronous>, transform_indices = @transform_8, window_bounds = array<i64: 8, 8>}, {pipeline_mode = #tpu.pipeline_mode<synchronous>, transform_indices = @transform_9, window_bounds = array<i64: 8, 3>}, {pipeline_mode = #tpu.pipeline_mode<synchronous>, transform_indices = @transform_10, window_bounds = array<i64: 4, 8>}, {pipeline_mode = #tpu.pipeline_mode<synchronous>, transform_indices = @transform_11, window_bounds = array<i64: 4, 3>}, {pipeline_mode = #tpu.pipeline_mode<synchronous>, transform_indices = @transform_12, window_bounds = array<i64: 4, 128, 128>}, {pipeline_mode = #tpu.pipeline_mode<synchronous>, transform_indices = @transform_13, window_bounds = array<i64: 4, 12, 4>}, {pipeline_mode = #tpu.pipeline_mode<synchronous>, transform_indices = @transform_14, window_bounds = array<i64: 12, 1>}, {pipeline_mode = #tpu.pipeline_mode<synchronous>, transform_indices = @transform_15, window_bounds = array<i64: 20, 128>}]} {
    %0 = tpu.iota {dimensions = array<i32: 1>} : vector<1x128xi32>
    %c98_i32 = arith.constant 98 : i32
    %1 = vector.broadcast %c98_i32 : i32 to vector<1x128xi32>
    %2 = arith.cmpi slt, %0, %1 : vector<1x128xi32>
    %3 = arith.extui %2 : vector<1x128xi1> to vector<1x128xi32>
    %4 = arith.sitofp %3 : vector<1x128xi32> to vector<1x128xf32>
    %c0 = arith.constant 0 : index
    %c0_0 = arith.constant 0 : index
    %5 = vector.load %arg1[%c0, %c0_0] : memref<12x128xf32, #tpu.memory_space<vmem>>, vector<12x128xf32>
    %c0_1 = arith.constant 0 : index
    %c0_2 = arith.constant 0 : index
    %c0_3 = arith.constant 0 : index
    %6 = vector.load %arg2[%c0_1, %c0_2, %c0_3] : memref<4x128x128xf32, #tpu.memory_space<vmem>>, vector<1x128x128xf32>
    %7 = vector.shape_cast %6 : vector<1x128x128xf32> to vector<128x128xf32>
    %cst = arith.constant dense<0.000000e+00> : vector<12x128xf32>
    %8 = tpu.matmul %5, %7, %cst {dimension_numbers = #tpu.dot_dimension_numbers<[1], [0], [0], [1], [0, 0, 1, 1], [], []>} : vector<12x128xf32>, vector<128x128xf32>, vector<12x128xf32> -> vector<12x128xf32>
    %c0_4 = arith.constant 0 : index
    %c0_5 = arith.constant 0 : index
    %c0_6 = arith.constant 0 : index
    %9 = vector.load %arg3[%c0_4, %c0_5, %c0_6] : memref<4x4x12xf32, #tpu.memory_space<vmem>>, vector<1x4x12xf32>
    %10 = vector.shape_cast %9 : vector<1x4x12xf32> to vector<4x12xf32>
    %cst_7 = arith.constant dense<0.000000e+00> : vector<4x128xf32>
    %11 = tpu.matmul %10, %8, %cst_7 {dimension_numbers = #tpu.dot_dimension_numbers<[1], [0], [0], [1], [0, 0, 1, 1], [], []>} : vector<4x12xf32>, vector<12x128xf32>, vector<4x128xf32> -> vector<4x128xf32>
    %c1 = arith.constant 1 : index
    %c0_8 = arith.constant 0 : index
    %c0_9 = arith.constant 0 : index
    %12 = vector.load %arg2[%c1, %c0_8, %c0_9] : memref<4x128x128xf32, #tpu.memory_space<vmem>>, vector<1x128x128xf32>
    %13 = vector.shape_cast %12 : vector<1x128x128xf32> to vector<128x128xf32>
    %cst_10 = arith.constant dense<0.000000e+00> : vector<12x128xf32>
    %14 = tpu.matmul %5, %13, %cst_10 {dimension_numbers = #tpu.dot_dimension_numbers<[1], [0], [0], [1], [0, 0, 1, 1], [], []>} : vector<12x128xf32>, vector<128x128xf32>, vector<12x128xf32> -> vector<12x128xf32>
    %c1_11 = arith.constant 1 : index
    %c0_12 = arith.constant 0 : index
    %c0_13 = arith.constant 0 : index
    %15 = vector.load %arg3[%c1_11, %c0_12, %c0_13] : memref<4x4x12xf32, #tpu.memory_space<vmem>>, vector<1x4x12xf32>
    %16 = vector.shape_cast %15 : vector<1x4x12xf32> to vector<4x12xf32>
    %cst_14 = arith.constant dense<0.000000e+00> : vector<4x128xf32>
    %17 = tpu.matmul %16, %14, %cst_14 {dimension_numbers = #tpu.dot_dimension_numbers<[1], [0], [0], [1], [0, 0, 1, 1], [], []>} : vector<4x12xf32>, vector<12x128xf32>, vector<4x128xf32> -> vector<4x128xf32>
    %18 = arith.addf %11, %17 : vector<4x128xf32>
    %c2 = arith.constant 2 : index
    %c0_15 = arith.constant 0 : index
    %c0_16 = arith.constant 0 : index
    %19 = vector.load %arg2[%c2, %c0_15, %c0_16] : memref<4x128x128xf32, #tpu.memory_space<vmem>>, vector<1x128x128xf32>
    %20 = vector.shape_cast %19 : vector<1x128x128xf32> to vector<128x128xf32>
    %cst_17 = arith.constant dense<0.000000e+00> : vector<12x128xf32>
    %21 = tpu.matmul %5, %20, %cst_17 {dimension_numbers = #tpu.dot_dimension_numbers<[1], [0], [0], [1], [0, 0, 1, 1], [], []>} : vector<12x128xf32>, vector<128x128xf32>, vector<12x128xf32> -> vector<12x128xf32>
    %c2_18 = arith.constant 2 : index
    %c0_19 = arith.constant 0 : index
    %c0_20 = arith.constant 0 : index
    %22 = vector.load %arg3[%c2_18, %c0_19, %c0_20] : memref<4x4x12xf32, #tpu.memory_space<vmem>>, vector<1x4x12xf32>
    %23 = vector.shape_cast %22 : vector<1x4x12xf32> to vector<4x12xf32>
    %cst_21 = arith.constant dense<0.000000e+00> : vector<4x128xf32>
    %24 = tpu.matmul %23, %21, %cst_21 {dimension_numbers = #tpu.dot_dimension_numbers<[1], [0], [0], [1], [0, 0, 1, 1], [], []>} : vector<4x12xf32>, vector<12x128xf32>, vector<4x128xf32> -> vector<4x128xf32>
    %25 = arith.addf %18, %24 : vector<4x128xf32>
    %c3 = arith.constant 3 : index
    %c0_22 = arith.constant 0 : index
    %c0_23 = arith.constant 0 : index
    %26 = vector.load %arg2[%c3, %c0_22, %c0_23] : memref<4x128x128xf32, #tpu.memory_space<vmem>>, vector<1x128x128xf32>
    %27 = vector.shape_cast %26 : vector<1x128x128xf32> to vector<128x128xf32>
    %cst_24 = arith.constant dense<0.000000e+00> : vector<12x128xf32>
    %28 = tpu.matmul %5, %27, %cst_24 {dimension_numbers = #tpu.dot_dimension_numbers<[1], [0], [0], [1], [0, 0, 1, 1], [], []>} : vector<12x128xf32>, vector<128x128xf32>, vector<12x128xf32> -> vector<12x128xf32>
    %c3_25 = arith.constant 3 : index
    %c0_26 = arith.constant 0 : index
    %c0_27 = arith.constant 0 : index
    %29 = vector.load %arg3[%c3_25, %c0_26, %c0_27] : memref<4x4x12xf32, #tpu.memory_space<vmem>>, vector<1x4x12xf32>
    %30 = vector.shape_cast %29 : vector<1x4x12xf32> to vector<4x12xf32>
    %cst_28 = arith.constant dense<0.000000e+00> : vector<4x128xf32>
    %31 = tpu.matmul %30, %28, %cst_28 {dimension_numbers = #tpu.dot_dimension_numbers<[1], [0], [0], [1], [0, 0, 1, 1], [], []>} : vector<4x12xf32>, vector<12x128xf32>, vector<4x128xf32> -> vector<4x128xf32>
    %32 = arith.addf %25, %31 : vector<4x128xf32>
    %c0_29 = arith.constant 0 : index
    %c0_30 = arith.constant 0 : index
    %33 = vector.load %arg4[%c0_29, %c0_30] : memref<4x1xf32, #tpu.memory_space<vmem>>, vector<4x1xf32>
    %34 = vector.broadcast %33 : vector<4x1xf32> to vector<4x128xf32>
    %35 = arith.addf %32, %34 : vector<4x128xf32>
    %cst_31 = arith.constant 0.000000e+00 : f32
    %36 = vector.broadcast %cst_31 : f32 to vector<4x128xf32>
    %37 = arith.maximumf %35, %36 : vector<4x128xf32>
    %c0_32 = arith.constant 0 : index
    %c0_33 = arith.constant 0 : index
    %38 = vector.load %arg5[%c0_32, %c0_33] : memref<8x4xf32, #tpu.memory_space<vmem>>, vector<8x4xf32>
    %c0_34 = arith.constant 0 : index
    %c0_35 = arith.constant 0 : index
    %39 = vector.load %arg6[%c0_34, %c0_35] : memref<8x3xf32, #tpu.memory_space<vmem>>, vector<8x3xf32>
    %cst_36 = arith.constant dense<0.000000e+00> : vector<8x128xf32>
    %40 = tpu.matmul %38, %37, %cst_36 {dimension_numbers = #tpu.dot_dimension_numbers<[1], [0], [0], [1], [0, 0, 1, 1], [], []>} : vector<8x4xf32>, vector<4x128xf32>, vector<8x128xf32> -> vector<8x128xf32>
    %41 = vector.extract_strided_slice %39 {offsets = [0, 0], sizes = [8, 1], strides = [1, 1]} : vector<8x3xf32> to vector<8x1xf32>
    %42 = vector.broadcast %41 : vector<8x1xf32> to vector<8x128xf32>
    %43 = arith.addf %40, %42 : vector<8x128xf32>
    %cst_37 = arith.constant 0.000000e+00 : f32
    %44 = vector.broadcast %cst_37 : f32 to vector<8x128xf32>
    %45 = arith.maximumf %43, %44 : vector<8x128xf32>
    %46 = vector.broadcast %4 : vector<1x128xf32> to vector<8x128xf32>
    %47 = arith.mulf %45, %46 : vector<8x128xf32>
    %cst_38 = arith.constant dense<0.000000e+00> : vector<8xf32>
    %48 = vector.multi_reduction <add>, %47, %cst_38 [1] : vector<8x128xf32> to vector<8xf32>
    %49 = vector.shape_cast %48 : vector<8xf32> to vector<8x1xf32>
    %cst_39 = arith.constant 0.0102040814 : f32
    %50 = vector.broadcast %cst_39 : f32 to vector<8x1xf32>
    %51 = arith.mulf %49, %50 : vector<8x1xf32>
    %52 = vector.broadcast %51 : vector<8x1xf32> to vector<8x128xf32>
    %53 = arith.subf %45, %52 : vector<8x128xf32>
    %54 = vector.broadcast %4 : vector<1x128xf32> to vector<8x128xf32>
    %55 = arith.mulf %53, %54 : vector<8x128xf32>
    %56 = arith.mulf %55, %55 : vector<8x128xf32>
    %cst_40 = arith.constant dense<0.000000e+00> : vector<8xf32>
    %57 = vector.multi_reduction <add>, %56, %cst_40 [1] : vector<8x128xf32> to vector<8xf32>
    %58 = vector.shape_cast %57 : vector<8xf32> to vector<8x1xf32>
    %cst_41 = arith.constant 0.0102040814 : f32
    %59 = vector.broadcast %cst_41 : f32 to vector<8x1xf32>
    %60 = arith.mulf %58, %59 : vector<8x1xf32>
    %cst_42 = arith.constant 9.99999974E-6 : f32
    %61 = vector.broadcast %cst_42 : f32 to vector<8x1xf32>
    %62 = arith.addf %60, %61 : vector<8x1xf32>
    %63 = math.rsqrt %62 : vector<8x1xf32>
    %64 = vector.broadcast %63 : vector<8x1xf32> to vector<8x128xf32>
    %65 = arith.mulf %55, %64 : vector<8x128xf32>
    %66 = vector.extract_strided_slice %39 {offsets = [0, 1], sizes = [8, 1], strides = [1, 1]} : vector<8x3xf32> to vector<8x1xf32>
    %67 = vector.broadcast %66 : vector<8x1xf32> to vector<8x128xf32>
    %68 = arith.mulf %65, %67 : vector<8x128xf32>
    %69 = vector.extract_strided_slice %39 {offsets = [0, 2], sizes = [8, 1], strides = [1, 1]} : vector<8x3xf32> to vector<8x1xf32>
    %70 = vector.broadcast %69 : vector<8x1xf32> to vector<8x128xf32>
    %71 = arith.addf %68, %70 : vector<8x128xf32>
    %c0_43 = arith.constant 0 : index
    %c0_44 = arith.constant 0 : index
    %72 = vector.load %arg7[%c0_43, %c0_44] : memref<8x8xf32, #tpu.memory_space<vmem>>, vector<8x8xf32>
    %c0_45 = arith.constant 0 : index
    %c0_46 = arith.constant 0 : index
    %73 = vector.load %arg8[%c0_45, %c0_46] : memref<8x3xf32, #tpu.memory_space<vmem>>, vector<8x3xf32>
    %cst_47 = arith.constant dense<0.000000e+00> : vector<8x128xf32>
    %74 = tpu.matmul %72, %71, %cst_47 {dimension_numbers = #tpu.dot_dimension_numbers<[1], [0], [0], [1], [0, 0, 1, 1], [], []>} : vector<8x8xf32>, vector<8x128xf32>, vector<8x128xf32> -> vector<8x128xf32>
    %75 = vector.extract_strided_slice %73 {offsets = [0, 0], sizes = [8, 1], strides = [1, 1]} : vector<8x3xf32> to vector<8x1xf32>
    %76 = vector.broadcast %75 : vector<8x1xf32> to vector<8x128xf32>
    %77 = arith.addf %74, %76 : vector<8x128xf32>
    %cst_48 = arith.constant 0.000000e+00 : f32
    %78 = vector.broadcast %cst_48 : f32 to vector<8x128xf32>
    %79 = arith.maximumf %77, %78 : vector<8x128xf32>
    %80 = vector.broadcast %4 : vector<1x128xf32> to vector<8x128xf32>
    %81 = arith.mulf %79, %80 : vector<8x128xf32>
    %cst_49 = arith.constant dense<0.000000e+00> : vector<8xf32>
    %82 = vector.multi_reduction <add>, %81, %cst_49 [1] : vector<8x128xf32> to vector<8xf32>
    %83 = vector.shape_cast %82 : vector<8xf32> to vector<8x1xf32>
    %cst_50 = arith.constant 0.0102040814 : f32
    %84 = vector.broadcast %cst_50 : f32 to vector<8x1xf32>
    %85 = arith.mulf %83, %84 : vector<8x1xf32>
    %86 = vector.broadcast %85 : vector<8x1xf32> to vector<8x128xf32>
    %87 = arith.subf %79, %86 : vector<8x128xf32>
    %88 = vector.broadcast %4 : vector<1x128xf32> to vector<8x128xf32>
    %89 = arith.mulf %87, %88 : vector<8x128xf32>
    %90 = arith.mulf %89, %89 : vector<8x128xf32>
    %cst_51 = arith.constant dense<0.000000e+00> : vector<8xf32>
    %91 = vector.multi_reduction <add>, %90, %cst_51 [1] : vector<8x128xf32> to vector<8xf32>
    %92 = vector.shape_cast %91 : vector<8xf32> to vector<8x1xf32>
    %cst_52 = arith.constant 0.0102040814 : f32
    %93 = vector.broadcast %cst_52 : f32 to vector<8x1xf32>
    %94 = arith.mulf %92, %93 : vector<8x1xf32>
    %cst_53 = arith.constant 9.99999974E-6 : f32
    %95 = vector.broadcast %cst_53 : f32 to vector<8x1xf32>
    %96 = arith.addf %94, %95 : vector<8x1xf32>
    %97 = math.rsqrt %96 : vector<8x1xf32>
    %98 = vector.broadcast %97 : vector<8x1xf32> to vector<8x128xf32>
    %99 = arith.mulf %89, %98 : vector<8x128xf32>
    %100 = vector.extract_strided_slice %73 {offsets = [0, 1], sizes = [8, 1], strides = [1, 1]} : vector<8x3xf32> to vector<8x1xf32>
    %101 = vector.broadcast %100 : vector<8x1xf32> to vector<8x128xf32>
    %102 = arith.mulf %99, %101 : vector<8x128xf32>
    %103 = vector.extract_strided_slice %73 {offsets = [0, 2], sizes = [8, 1], strides = [1, 1]} : vector<8x3xf32> to vector<8x1xf32>
    %104 = vector.broadcast %103 : vector<8x1xf32> to vector<8x128xf32>
    %105 = arith.addf %102, %104 : vector<8x128xf32>
    %c0_54 = arith.constant 0 : index
    %c0_55 = arith.constant 0 : index
    %106 = vector.load %arg16[%c0_54, %c0_55] : memref<20x128xf32, #tpu.memory_space<vmem>>, vector<8x128xf32>
    tpu.vector_store %arg16[%c0_54, %c0_55], %105 {strides = array<i32>} : memref<20x128xf32, #tpu.memory_space<vmem>>, vector<8x128xf32>,
    %c0_56 = arith.constant 0 : index
    %c0_57 = arith.constant 0 : index
    %107 = vector.load %arg9[%c0_56, %c0_57] : memref<8x8xf32, #tpu.memory_space<vmem>>, vector<8x8xf32>
    %c0_58 = arith.constant 0 : index
    %c0_59 = arith.constant 0 : index
    %108 = vector.load %arg10[%c0_58, %c0_59] : memref<8x3xf32, #tpu.memory_space<vmem>>, vector<8x3xf32>
    %cst_60 = arith.constant dense<0.000000e+00> : vector<8x128xf32>
    %109 = tpu.matmul %107, %105, %cst_60 {dimension_numbers = #tpu.dot_dimension_numbers<[1], [0], [0], [1], [0, 0, 1, 1], [], []>} : vector<8x8xf32>, vector<8x128xf32>, vector<8x128xf32> -> vector<8x128xf32>
    %110 = vector.extract_strided_slice %108 {offsets = [0, 0], sizes = [8, 1], strides = [1, 1]} : vector<8x3xf32> to vector<8x1xf32>
    %111 = vector.broadcast %110 : vector<8x1xf32> to vector<8x128xf32>
    %112 = arith.addf %109, %111 : vector<8x128xf32>
    %cst_61 = arith.constant 0.000000e+00 : f32
    %113 = vector.broadcast %cst_61 : f32 to vector<8x128xf32>
    %114 = arith.maximumf %112, %113 : vector<8x128xf32>
    %115 = vector.broadcast %4 : vector<1x128xf32> to vector<8x128xf32>
    %116 = arith.mulf %114, %115 : vector<8x128xf32>
    %cst_62 = arith.constant dense<0.000000e+00> : vector<8xf32>
    %117 = vector.multi_reduction <add>, %116, %cst_62 [1] : vector<8x128xf32> to vector<8xf32>
    %118 = vector.shape_cast %117 : vector<8xf32> to vector<8x1xf32>
    %cst_63 = arith.constant 0.0102040814 : f32
    %119 = vector.broadcast %cst_63 : f32 to vector<8x1xf32>
    %120 = arith.mulf %118, %119 : vector<8x1xf32>
    %121 = vector.broadcast %120 : vector<8x1xf32> to vector<8x128xf32>
    %122 = arith.subf %114, %121 : vector<8x128xf32>
    %123 = vector.broadcast %4 : vector<1x128xf32> to vector<8x128xf32>
    %124 = arith.mulf %122, %123 : vector<8x128xf32>
    %125 = arith.mulf %124, %124 : vector<8x128xf32>
    %cst_64 = arith.constant dense<0.000000e+00> : vector<8xf32>
    %126 = vector.multi_reduction <add>, %125, %cst_64 [1] : vector<8x128xf32> to vector<8xf32>
    %127 = vector.shape_cast %126 : vector<8xf32> to vector<8x1xf32>
    %cst_65 = arith.constant 0.0102040814 : f32
    %128 = vector.broadcast %cst_65 : f32 to vector<8x1xf32>
    %129 = arith.mulf %127, %128 : vector<8x1xf32>
    %cst_66 = arith.constant 9.99999974E-6 : f32
    %130 = vector.broadcast %cst_66 : f32 to vector<8x1xf32>
    %131 = arith.addf %129, %130 : vector<8x1xf32>
    %132 = math.rsqrt %131 : vector<8x1xf32>
    %133 = vector.broadcast %132 : vector<8x1xf32> to vector<8x128xf32>
    %134 = arith.mulf %124, %133 : vector<8x128xf32>
    %135 = vector.extract_strided_slice %108 {offsets = [0, 1], sizes = [8, 1], strides = [1, 1]} : vector<8x3xf32> to vector<8x1xf32>
    %136 = vector.broadcast %135 : vector<8x1xf32> to vector<8x128xf32>
    %137 = arith.mulf %134, %136 : vector<8x128xf32>
    %138 = vector.extract_strided_slice %108 {offsets = [0, 2], sizes = [8, 1], strides = [1, 1]} : vector<8x3xf32> to vector<8x1xf32>
    %139 = vector.broadcast %138 : vector<8x1xf32> to vector<8x128xf32>
    %140 = arith.addf %137, %139 : vector<8x128xf32>
    %c0_67 = arith.constant 0 : index
    %c0_68 = arith.constant 0 : index
    %141 = vector.load %arg11[%c0_67, %c0_68] : memref<4x8xf32, #tpu.memory_space<vmem>>, vector<4x8xf32>
    %c0_69 = arith.constant 0 : index
    %c0_70 = arith.constant 0 : index
    %142 = vector.load %arg12[%c0_69, %c0_70] : memref<4x3xf32, #tpu.memory_space<vmem>>, vector<4x3xf32>
    %cst_71 = arith.constant dense<0.000000e+00> : vector<4x128xf32>
    %143 = tpu.matmul %141, %140, %cst_71 {dimension_numbers = #tpu.dot_dimension_numbers<[1], [0], [0], [1], [0, 0, 1, 1], [], []>} : vector<4x8xf32>, vector<8x128xf32>, vector<4x128xf32> -> vector<4x128xf32>
    %144 = vector.extract_strided_slice %142 {offsets = [0, 0], sizes = [4, 1], strides = [1, 1]} : vector<4x3xf32> to vector<4x1xf32>
    %145 = vector.broadcast %144 : vector<4x1xf32> to vector<4x128xf32>
    %146 = arith.addf %143, %145 : vector<4x128xf32>
    %cst_72 = arith.constant 0.000000e+00 : f32
    %147 = vector.broadcast %cst_72 : f32 to vector<4x128xf32>
    %148 = arith.maximumf %146, %147 : vector<4x128xf32>
    %149 = vector.broadcast %4 : vector<1x128xf32> to vector<4x128xf32>
    %150 = arith.mulf %148, %149 : vector<4x128xf32>
    %cst_73 = arith.constant dense<0.000000e+00> : vector<4xf32>
    %151 = vector.multi_reduction <add>, %150, %cst_73 [1] : vector<4x128xf32> to vector<4xf32>
    %152 = vector.shape_cast %151 : vector<4xf32> to vector<4x1xf32>
    %cst_74 = arith.constant 0.0102040814 : f32
    %153 = vector.broadcast %cst_74 : f32 to vector<4x1xf32>
    %154 = arith.mulf %152, %153 : vector<4x1xf32>
    %155 = vector.broadcast %154 : vector<4x1xf32> to vector<4x128xf32>
    %156 = arith.subf %148, %155 : vector<4x128xf32>
    %157 = vector.broadcast %4 : vector<1x128xf32> to vector<4x128xf32>
    %158 = arith.mulf %156, %157 : vector<4x128xf32>
    %159 = arith.mulf %158, %158 : vector<4x128xf32>
    %cst_75 = arith.constant dense<0.000000e+00> : vector<4xf32>
    %160 = vector.multi_reduction <add>, %159, %cst_75 [1] : vector<4x128xf32> to vector<4xf32>
    %161 = vector.shape_cast %160 : vector<4xf32> to vector<4x1xf32>
    %cst_76 = arith.constant 0.0102040814 : f32
    %162 = vector.broadcast %cst_76 : f32 to vector<4x1xf32>
    %163 = arith.mulf %161, %162 : vector<4x1xf32>
    %cst_77 = arith.constant 9.99999974E-6 : f32
    %164 = vector.broadcast %cst_77 : f32 to vector<4x1xf32>
    %165 = arith.addf %163, %164 : vector<4x1xf32>
    %166 = math.rsqrt %165 : vector<4x1xf32>
    %167 = vector.broadcast %166 : vector<4x1xf32> to vector<4x128xf32>
    %168 = arith.mulf %158, %167 : vector<4x128xf32>
    %169 = vector.extract_strided_slice %142 {offsets = [0, 1], sizes = [4, 1], strides = [1, 1]} : vector<4x3xf32> to vector<4x1xf32>
    %170 = vector.broadcast %169 : vector<4x1xf32> to vector<4x128xf32>
    %171 = arith.mulf %168, %170 : vector<4x128xf32>
    %172 = vector.extract_strided_slice %142 {offsets = [0, 2], sizes = [4, 1], strides = [1, 1]} : vector<4x3xf32> to vector<4x1xf32>
    %173 = vector.broadcast %172 : vector<4x1xf32> to vector<4x128xf32>
    %174 = arith.addf %171, %173 : vector<4x128xf32>
    %c0_78 = arith.constant 0 : index
    %c0_79 = arith.constant 0 : index
    %c0_80 = arith.constant 0 : index
    %175 = vector.load %arg13[%c0_78, %c0_79, %c0_80] : memref<4x128x128xf32, #tpu.memory_space<vmem>>, vector<1x128x128xf32>
    %176 = vector.shape_cast %175 : vector<1x128x128xf32> to vector<128x128xf32>
    %cst_81 = arith.constant dense<0.000000e+00> : vector<4x128xf32>
    %177 = tpu.matmul %174, %176, %cst_81 {dimension_numbers = #tpu.dot_dimension_numbers<[1], [0], [0], [1], [0, 0, 1, 1], [], []>} : vector<4x128xf32>, vector<128x128xf32>, vector<4x128xf32> -> vector<4x128xf32>
    %c0_82 = arith.constant 0 : index
    %c0_83 = arith.constant 0 : index
    %c0_84 = arith.constant 0 : index
    %178 = vector.load %arg14[%c0_82, %c0_83, %c0_84] : memref<4x12x4xf32, #tpu.memory_space<vmem>>, vector<1x12x4xf32>
    %179 = vector.shape_cast %178 : vector<1x12x4xf32> to vector<12x4xf32>
    %cst_85 = arith.constant dense<0.000000e+00> : vector<12x128xf32>
    %180 = tpu.matmul %179, %177, %cst_85 {dimension_numbers = #tpu.dot_dimension_numbers<[1], [0], [0], [1], [0, 0, 1, 1], [], []>} : vector<12x4xf32>, vector<4x128xf32>, vector<12x128xf32> -> vector<12x128xf32>
    %c1_86 = arith.constant 1 : index
    %c0_87 = arith.constant 0 : index
    %c0_88 = arith.constant 0 : index
    %181 = vector.load %arg13[%c1_86, %c0_87, %c0_88] : memref<4x128x128xf32, #tpu.memory_space<vmem>>, vector<1x128x128xf32>
    %182 = vector.shape_cast %181 : vector<1x128x128xf32> to vector<128x128xf32>
    %cst_89 = arith.constant dense<0.000000e+00> : vector<4x128xf32>
    %183 = tpu.matmul %174, %182, %cst_89 {dimension_numbers = #tpu.dot_dimension_numbers<[1], [0], [0], [1], [0, 0, 1, 1], [], []>} : vector<4x128xf32>, vector<128x128xf32>, vector<4x128xf32> -> vector<4x128xf32>
    %c1_90 = arith.constant 1 : index
    %c0_91 = arith.constant 0 : index
    %c0_92 = arith.constant 0 : index
    %184 = vector.load %arg14[%c1_90, %c0_91, %c0_92] : memref<4x12x4xf32, #tpu.memory_space<vmem>>, vector<1x12x4xf32>
    %185 = vector.shape_cast %184 : vector<1x12x4xf32> to vector<12x4xf32>
    %cst_93 = arith.constant dense<0.000000e+00> : vector<12x128xf32>
    %186 = tpu.matmul %185, %183, %cst_93 {dimension_numbers = #tpu.dot_dimension_numbers<[1], [0], [0], [1], [0, 0, 1, 1], [], []>} : vector<12x4xf32>, vector<4x128xf32>, vector<12x128xf32> -> vector<12x128xf32>
    %187 = arith.addf %180, %186 : vector<12x128xf32>
    %c2_94 = arith.constant 2 : index
    %c0_95 = arith.constant 0 : index
    %c0_96 = arith.constant 0 : index
    %188 = vector.load %arg13[%c2_94, %c0_95, %c0_96] : memref<4x128x128xf32, #tpu.memory_space<vmem>>, vector<1x128x128xf32>
    %189 = vector.shape_cast %188 : vector<1x128x128xf32> to vector<128x128xf32>
    %cst_97 = arith.constant dense<0.000000e+00> : vector<4x128xf32>
    %190 = tpu.matmul %174, %189, %cst_97 {dimension_numbers = #tpu.dot_dimension_numbers<[1], [0], [0], [1], [0, 0, 1, 1], [], []>} : vector<4x128xf32>, vector<128x128xf32>, vector<4x128xf32> -> vector<4x128xf32>
    %c2_98 = arith.constant 2 : index
    %c0_99 = arith.constant 0 : index
    %c0_100 = arith.constant 0 : index
    %191 = vector.load %arg14[%c2_98, %c0_99, %c0_100] : memref<4x12x4xf32, #tpu.memory_space<vmem>>, vector<1x12x4xf32>
    %192 = vector.shape_cast %191 : vector<1x12x4xf32> to vector<12x4xf32>
    %cst_101 = arith.constant dense<0.000000e+00> : vector<12x128xf32>
    %193 = tpu.matmul %192, %190, %cst_101 {dimension_numbers = #tpu.dot_dimension_numbers<[1], [0], [0], [1], [0, 0, 1, 1], [], []>} : vector<12x4xf32>, vector<4x128xf32>, vector<12x128xf32> -> vector<12x128xf32>
    %194 = arith.addf %187, %193 : vector<12x128xf32>
    %c3_102 = arith.constant 3 : index
    %c0_103 = arith.constant 0 : index
    %c0_104 = arith.constant 0 : index
    %195 = vector.load %arg13[%c3_102, %c0_103, %c0_104] : memref<4x128x128xf32, #tpu.memory_space<vmem>>, vector<1x128x128xf32>
    %196 = vector.shape_cast %195 : vector<1x128x128xf32> to vector<128x128xf32>
    %cst_105 = arith.constant dense<0.000000e+00> : vector<4x128xf32>
    %197 = tpu.matmul %174, %196, %cst_105 {dimension_numbers = #tpu.dot_dimension_numbers<[1], [0], [0], [1], [0, 0, 1, 1], [], []>} : vector<4x128xf32>, vector<128x128xf32>, vector<4x128xf32> -> vector<4x128xf32>
    %c3_106 = arith.constant 3 : index
    %c0_107 = arith.constant 0 : index
    %c0_108 = arith.constant 0 : index
    %198 = vector.load %arg14[%c3_106, %c0_107, %c0_108] : memref<4x12x4xf32, #tpu.memory_space<vmem>>, vector<1x12x4xf32>
    %199 = vector.shape_cast %198 : vector<1x12x4xf32> to vector<12x4xf32>
    %cst_109 = arith.constant dense<0.000000e+00> : vector<12x128xf32>
    %200 = tpu.matmul %199, %197, %cst_109 {dimension_numbers = #tpu.dot_dimension_numbers<[1], [0], [0], [1], [0, 0, 1, 1], [], []>} : vector<12x4xf32>, vector<4x128xf32>, vector<12x128xf32> -> vector<12x128xf32>
    %201 = arith.addf %194, %200 : vector<12x128xf32>
    %c0_110 = arith.constant 0 : index
    %c0_111 = arith.constant 0 : index
    %202 = vector.load %arg15[%c0_110, %c0_111] : memref<12x1xf32, #tpu.memory_space<vmem>>, vector<12x1xf32>
    %203 = vector.broadcast %202 : vector<12x1xf32> to vector<12x128xf32>
    %204 = arith.addf %201, %203 : vector<12x128xf32>
    %cst_112 = arith.constant 0.000000e+00 : f32
    %205 = vector.broadcast %cst_112 : f32 to vector<12x128xf32>
    %206 = arith.maximumf %204, %205 : vector<12x128xf32>
    %c8 = arith.constant 8 : index
    %c0_113 = arith.constant 0 : index
    %207 = vector.load %arg16[%c8, %c0_113] : memref<20x128xf32, #tpu.memory_space<vmem>>, vector<12x128xf32>
    tpu.vector_store %arg16[%c8, %c0_113], %206 {strides = array<i32>} : memref<20x128xf32, #tpu.memory_space<vmem>>, vector<12x128xf32>,
    return
  }
  func.func @transform_0(%arg0: i32) -> (i32, i32) {
    %c0_i32 = arith.constant 0 : i32
    %c0_i32_0 = arith.constant 0 : i32
    %c0_i32_1 = arith.constant 0 : i32
    return %c0_i32, %c0_i32_0 : i32, i32
  }
  func.func @transform_1(%arg0: i32) -> (i32, i32, i32) {
    %c0_i32 = arith.constant 0 : i32
    %c0_i32_0 = arith.constant 0 : i32
    %c0_i32_1 = arith.constant 0 : i32
    %c0_i32_2 = arith.constant 0 : i32
    return %c0_i32, %c0_i32_0, %c0_i32_1 : i32, i32, i32
  }
  func.func @transform_2(%arg0: i32) -> (i32, i32, i32) {
    %c0_i32 = arith.constant 0 : i32
    %c0_i32_0 = arith.constant 0 : i32
    %c0_i32_1 = arith.constant 0 : i32
    %c0_i32_2 = arith.constant 0 : i32
    return %c0_i32, %c0_i32_0, %c0_i32_1 : i32, i32, i32
  }
  func.func @transform_3(%arg0: i32) -> (i32, i32) {
    %c0_i32 = arith.constant 0 : i32
    %c0_i32_0 = arith.constant 0 : i32
    %c0_i32_1 = arith.constant 0 : i32
    return %c0_i32, %c0_i32_0 : i32, i32
  }
  func.func @transform_4(%arg0: i32) -> (i32, i32) {
    %c0_i32 = arith.constant 0 : i32
    %c0_i32_0 = arith.constant 0 : i32
    %c0_i32_1 = arith.constant 0 : i32
    return %c0_i32, %c0_i32_0 : i32, i32
  }
  func.func @transform_5(%arg0: i32) -> (i32, i32) {
    %c0_i32 = arith.constant 0 : i32
    %c0_i32_0 = arith.constant 0 : i32
    %c0_i32_1 = arith.constant 0 : i32
    return %c0_i32, %c0_i32_0 : i32, i32
  }
  func.func @transform_6(%arg0: i32) -> (i32, i32) {
    %c0_i32 = arith.constant 0 : i32
    %c0_i32_0 = arith.constant 0 : i32
    %c0_i32_1 = arith.constant 0 : i32
    return %c0_i32, %c0_i32_0 : i32, i32
  }
  func.func @transform_7(%arg0: i32) -> (i32, i32) {
    %c0_i32 = arith.constant 0 : i32
    %c0_i32_0 = arith.constant 0 : i32
    %c0_i32_1 = arith.constant 0 : i32
    return %c0_i32, %c0_i32_0 : i32, i32
  }
  func.func @transform_8(%arg0: i32) -> (i32, i32) {
    %c0_i32 = arith.constant 0 : i32
    %c0_i32_0 = arith.constant 0 : i32
    %c0_i32_1 = arith.constant 0 : i32
    return %c0_i32, %c0_i32_0 : i32, i32
  }
  func.func @transform_9(%arg0: i32) -> (i32, i32) {
    %c0_i32 = arith.constant 0 : i32
    %c0_i32_0 = arith.constant 0 : i32
    %c0_i32_1 = arith.constant 0 : i32
    return %c0_i32, %c0_i32_0 : i32, i32
  }
  func.func @transform_10(%arg0: i32) -> (i32, i32) {
    %c0_i32 = arith.constant 0 : i32
    %c0_i32_0 = arith.constant 0 : i32
    %c0_i32_1 = arith.constant 0 : i32
    return %c0_i32, %c0_i32_0 : i32, i32
  }
  func.func @transform_11(%arg0: i32) -> (i32, i32) {
    %c0_i32 = arith.constant 0 : i32
    %c0_i32_0 = arith.constant 0 : i32
    %c0_i32_1 = arith.constant 0 : i32
    return %c0_i32, %c0_i32_0 : i32, i32
  }
  func.func @transform_12(%arg0: i32) -> (i32, i32, i32) {
    %c0_i32 = arith.constant 0 : i32
    %c0_i32_0 = arith.constant 0 : i32
    %c0_i32_1 = arith.constant 0 : i32
    %c0_i32_2 = arith.constant 0 : i32
    return %c0_i32, %c0_i32_0, %c0_i32_1 : i32, i32, i32
  }
  func.func @transform_13(%arg0: i32) -> (i32, i32, i32) {
    %c0_i32 = arith.constant 0 : i32
    %c0_i32_0 = arith.constant 0 : i32
    %c0_i32_1 = arith.constant 0 : i32
    %c0_i32_2 = arith.constant 0 : i32
    return %c0_i32, %c0_i32_0, %c0_i32_1 : i32, i32, i32
  }
  func.func @transform_14(%arg0: i32) -> (i32, i32) {
    %c0_i32 = arith.constant 0 : i32
    %c0_i32_0 = arith.constant 0 : i32
    %c0_i32_1 = arith.constant 0 : i32
    return %c0_i32, %c0_i32_0 : i32, i32
  }
  func.func @transform_15(%arg0: i32) -> (i32, i32) {
    %c0_i32 = arith.constant 0 : i32
    %c0_i32_0 = arith.constant 0 : i32
    %c0_i32_1 = arith.constant 0 : i32
    return %c0_i32, %c0_i32_0 : i32, i32
  }
}

</mosaic_0001>

<bundles_post_ra>
// kernel: conv_autoencoder_forward.1
= control target key start
LH: loop header
LB: loop body
LE: loop exit
PB: predicated region body
PF: predicated region fallthrough
CT: control target
= control target key end

     0   :  { %v2568_v34 = vmov 0.0   ;;  %vm2569_vm0 = vmmov 0   ;;  %vm247_vm1 = vcmask 1043456   ;;  %vm243_vm2 = vcmask 97280   ;;  %s3308_s1 = inlined_call_operand.vmem [shape: f32[4,128,128], index: 1, kind: input, shape index: {}]   ;;  %s3309_s0 = inlined_call_operand.vmem [shape: f32[12,128], index: 0, kind: input, shape index: {}]   ;;  %s3310_s2 = inlined_call_operand.vmem [shape: f32[4,4,12], index: 2, kind: input, shape index: {}]   ;;  %s3311_s3 = inlined_call_operand.vmem [shape: f32[4,1], index: 3, kind: input, shape index: {}]   ;;  %s3312_s5 = inlined_call_operand.vmem [shape: f32[8,3], index: 5, kind: input, shape index: {}]   ;;  %s3313_s4 = inlined_call_operand.vmem [shape: f32[8,4], index: 4, kind: input, shape index: {}]   ;;  %s3314_s7 = inlined_call_operand.vmem [shape: f32[8,3], index: 7, kind: input, shape index: {}]   ;;  %s3315_s6 = inlined_call_operand.vmem [shape: f32[8,8], index: 6, kind: input, shape index: {}]   ;;  %s3316_s9 = inlined_call_operand.vmem [shape: f32[8,3], index: 9, kind: input, shape index: {}]   ;;  %s3317_s8 = inlined_call_operand.vmem [shape: f32[8,8], index: 8, kind: input, shape index: {}]   ;;  %s3318_s15 = inlined_call_operand.vmem [shape: f32[20,128], index: 15, kind: output, shape index: {}]   ;;  %s3319_s11 = inlined_call_operand.vmem [shape: f32[4,3], index: 11, kind: input, shape index: {}]   ;;  %s3320_s10 = inlined_call_operand.vmem [shape: f32[4,8], index: 10, kind: input, shape index: {}]   ;;  %s3321_s12 = inlined_call_operand.vmem [shape: f32[4,128,128], index: 12, kind: input, shape index: {}]   ;;  %s3322_s13 = inlined_call_operand.vmem [shape: f32[4,12,4], index: 13, kind: input, shape index: {}]   ;;  %s3323_s14 = inlined_call_operand.vmem [shape: f32[12,1], index: 14, kind: input, shape index: {}]  }
   0x1   :  { %v1907_v0 = vld [vmem:[%s3308_s1 + $0xf8] sm:$0xff]  ;;  %v1906_v2 = vld [vmem:[%s3308_s1 + $0xf0] sm:$0xff]  ;;  %v1905_v4 = vld [vmem:[%s3308_s1 + $0xe8] sm:$0xff]  ;;  %vm754_vm3 = vcmask 31744   ;;  %vm862_vm5 = vcmask 64512  }
   0x2   :  { %v72_v1 = vld [vmem:[%s3308_s1 + $0x78] sm:$0xff]  ;;  %2229 = vmatprep.subr.mxu1 %v1907_v0  ;;  %v71_v3 = vld [vmem:[%s3308_s1 + $0x70] sm:$0xff]  ;;  %v70_v5 = vld [vmem:[%s3308_s1 + $0x68] sm:$0xff] }
   0x3   :  { %2194 = vmatprep.subr.mxu0 %v72_v1  ;;  %2230 = vmatpush3.msra.mxu1 %v1907_v0  ;;  %v1904_v6 = vld [vmem:[%s3308_s1 + $0xe0] sm:$0xff]  ;;  %v1903_v8 = vld [vmem:[%s3308_s1 + $0xd8] sm:$0xff]  ;;  %v1902_v10 = vld [vmem:[%s3308_s1 + $0xd0] sm:$0xff] }
   0x4   :  { %2195 = vmatpush3.msra.mxu0 %v72_v1  ;;  %2231 = vmatprep.subr.mxu1 %v1906_v2  ;;  %v69_v7 = vld [vmem:[%s3308_s1 + $0x60] sm:$0xff]  ;;  %v68_v9 = vld [vmem:[%s3308_s1 + $0x58] sm:$0xff]  ;;  %v67_v11 = vld [vmem:[%s3308_s1 + $0x50] sm:$0xff] }
   0x5   :  { %2196 = vmatprep.subr.mxu0 %v71_v3  ;;  %2232 = vmatpush3.msra.mxu1 %v1906_v2  ;;  %v1901_v12 = vld [vmem:[%s3308_s1 + $0xc8] sm:$0xff]  ;;  %v1900_v14 = vld [vmem:[%s3308_s1 + $0xc0] sm:$0xff]  ;;  %v1899_v16 = vld [vmem:[%s3308_s1 + $0xb8] sm:$0xff] }
   0x6   :  { %2197 = vmatpush3.msra.mxu0 %v71_v3  ;;  %2233 = vmatprep.subr.mxu1 %v1905_v4  ;;  %v66_v13 = vld [vmem:[%s3308_s1 + $0x48] sm:$0xff]  ;;  %v65_v15 = vld [vmem:[%s3308_s1 + $0x40] sm:$0xff]  ;;  %v64_v17 = vld [vmem:[%s3308_s1 + $0x38] sm:$0xff] }
   0x7   :  { %2198 = vmatprep.subr.mxu0 %v70_v5  ;;  %2234 = vmatpush3.msra.mxu1 %v1905_v4  ;;  %v1898_v18 = vld [vmem:[%s3308_s1 + $0xb0] sm:$0xff]  ;;  %v1897_v20 = vld [vmem:[%s3308_s1 + $0xa8] sm:$0xff]  ;;  %v1896_v22 = vld [vmem:[%s3308_s1 + $0xa0] sm:$0xff] }
   0x8   :  { %2199 = vmatpush3.msra.mxu0 %v70_v5  ;;  %2235 = vmatprep.subr.mxu1 %v1904_v6  ;;  %v63_v19 = vld [vmem:[%s3308_s1 + $0x30] sm:$0xff]  ;;  %v62_v21 = vld [vmem:[%s3308_s1 + $0x28] sm:$0xff]  ;;  %v61_v23 = vld [vmem:[%s3308_s1 + $0x20] sm:$0xff] }
   0x9   :  { %2200 = vmatprep.subr.mxu0 %v69_v7  ;;  %2236 = vmatpush3.msra.mxu1 %v1904_v6  ;;  %v1895_v24 = vld [vmem:[%s3308_s1 + $0x98] sm:$0xff]  ;;  %v1894_v26 = vld [vmem:[%s3308_s1 + $0x90] sm:$0xff]  ;;  %v1893_v28 = vld [vmem:[%s3308_s1 + $0x88] sm:$0xff] }
   0xa   :  { %2201 = vmatpush3.msra.mxu0 %v69_v7  ;;  %2237 = vmatprep.subr.mxu1 %v1903_v8  ;;  %v60_v25 = vld [vmem:[%s3308_s1 + $0x18] sm:$0xff]  ;;  %v59_v27 = vld [vmem:[%s3308_s1 + $0x10] sm:$0xff]  ;;  %v58_v29 = vld [vmem:[%s3308_s1 + $0x8] sm:$0xff] }
   0xb   :  { %2202 = vmatprep.subr.mxu0 %v68_v9  ;;  %2238 = vmatpush3.msra.mxu1 %v1903_v8  ;;  %v1892_v30 = vld [vmem:[%s3308_s1 + $0x80] sm:$0xff]  ;;  %v2757_v33 = vld [vmem:[%s3309_s0 + $0x8] sm:$0xf]  ;;  %v1928_v38 = vld [vmem:[%s3308_s1 + $0x178] sm:$0xff] }
   0xc   :  { %2203 = vmatpush3.msra.mxu0 %v68_v9  ;;  %2239 = vmatprep.subr.mxu1 %v1902_v10  ;;  %v57_v31 = vld [vmem:[%s3308_s1] sm:$0xff]  ;;  %v1927_v42 = vld [vmem:[%s3308_s1 + $0x170] sm:$0xff]  ;;  %v1926_v43 = vld [vmem:[%s3308_s1 + $0x168] sm:$0xff] }
   0xd   :  { %2204 = vmatprep.subr.mxu0 %v67_v11  ;;  %2240 = vmatpush3.msra.mxu1 %v1902_v10  ;;  %v2752_v32 = vld [vmem:[%s3309_s0] sm:$0xff]  ;;  %v1924_v45 = vld [vmem:[%s3308_s1 + $0x158] sm:$0xff]  ;;  %v1923_v46 = vld [vmem:[%s3308_s1 + $0x150] sm:$0xff] }
   0xe   :  { %2205 = vmatpush3.msra.mxu0 %v67_v11  ;;  %2241 = vmatprep.subr.mxu1 %v1901_v12  ;;  %v1908_v37 = vld [vmem:[%s3310_s2 + $0x4] sm:$0xf]  ;;  %v148_v41 = vld [vmem:[%s3310_s2] sm:$0xf]  ;;  %v1922_v47 = vld [vmem:[%s3308_s1 + $0x148] sm:$0xff] }
   0xf   :  { %2206 = vmatprep.subr.mxu0 %v66_v13  ;;  %2242 = vmatpush3.msra.mxu1 %v1901_v12  ;;  %v1925_v44 = vld [vmem:[%s3308_s1 + $0x160] sm:$0xff]  ;;  %v1920_v49 = vld [vmem:[%s3308_s1 + $0x138] sm:$0xff]  ;;  %v1919_v50 = vld [vmem:[%s3308_s1 + $0x130] sm:$0xff] }
  0x10   :  { %2207 = vmatpush3.msra.mxu0 %v66_v13  ;;  %2243 = vmatprep.subr.mxu1 %v1900_v14  ;;  %v1921_v48 = vld [vmem:[%s3308_s1 + $0x140] sm:$0xff]  ;;  %v1918_v51 = vld [vmem:[%s3308_s1 + $0x128] sm:$0xff]  ;;  %v1916_v53 = vld [vmem:[%s3308_s1 + $0x118] sm:$0xff] }
  0x11   :  { %2208 = vmatprep.subr.mxu0 %v65_v15  ;;  %2244 = vmatpush3.msra.mxu1 %v1900_v14  ;;  %v1917_v52 = vld [vmem:[%s3308_s1 + $0x120] sm:$0xff]  ;;  %v1915_v54 = vld [vmem:[%s3308_s1 + $0x110] sm:$0xff]  ;;  %v1914_v55 = vld [vmem:[%s3308_s1 + $0x108] sm:$0xff] }
  0x12   :  { %2209 = vmatpush3.msra.mxu0 %v65_v15  ;;  %2245 = vmatprep.subr.mxu1 %v1899_v16  ;;  %v1913_v56 = vld [vmem:[%s3308_s1 + $0x100] sm:$0xff]  ;;  %v1929_v63 = vld [vmem:[%s3310_s2 + $0x8] sm:$0xf]  ;;  %v1947_v0 = vld [vmem:[%s3308_s1 + $0x1f8] sm:$0xff] }
  0x13   :  { %2210 = vmatprep.subr.mxu0 %v64_v17  ;;  %2246 = vmatpush3.msra.mxu1 %v1899_v16  ;;  %v1946_v2 = vld [vmem:[%s3308_s1 + $0x1f0] sm:$0xff]  ;;  %v1945_v3 = vld [vmem:[%s3308_s1 + $0x1e8] sm:$0xff]  ;;  %v1944_v4 = vld [vmem:[%s3308_s1 + $0x1e0] sm:$0xff] }
  0x14   :  { %2211 = vmatpush3.msra.mxu0 %v64_v17  ;;  %2247 = vmatprep.subr.mxu1 %v1898_v18  ;;  %v1943_v5 = vld [vmem:[%s3308_s1 + $0x1d8] sm:$0xff]  ;;  %v1942_v6 = vld [vmem:[%s3308_s1 + $0x1d0] sm:$0xff]  ;;  %v1941_v7 = vld [vmem:[%s3308_s1 + $0x1c8] sm:$0xff]  ;;  %v2570_v17 = vmov 0  }
  0x15   :  { %2212 = vmatprep.subr.mxu0 %v63_v19  ;;  %2248 = vmatpush3.msra.mxu1 %v1898_v18  ;;  %v1940_v8 = vld [vmem:[%s3308_s1 + $0x1c0] sm:$0xff]  ;;  %v1939_v9 = vld [vmem:[%s3308_s1 + $0x1b8] sm:$0xff]  ;;  %v1938_v10 = vld [vmem:[%s3308_s1 + $0x1b0] sm:$0xff] }
  0x16   :  { %2213 = vmatpush3.msra.mxu0 %v63_v19  ;;  %2249 = vmatprep.subr.mxu1 %v1897_v20  ;;  %v1937_v11 = vld [vmem:[%s3308_s1 + $0x1a8] sm:$0xff]  ;;  %v1936_v12 = vld [vmem:[%s3308_s1 + $0x1a0] sm:$0xff]  ;;  %v1935_v13 = vld [vmem:[%s3308_s1 + $0x198] sm:$0xff] }
  0x17   :  { %2214 = vmatprep.subr.mxu0 %v62_v21  ;;  %2250 = vmatpush3.msra.mxu1 %v1897_v20  ;;  %v1934_v14 = vld [vmem:[%s3308_s1 + $0x190] sm:$0xff]  ;;  %v1933_v15 = vld [vmem:[%s3308_s1 + $0x188] sm:$0xff]  ;;  %v1932_v16 = vld [vmem:[%s3308_s1 + $0x180] sm:$0xff] }
  0x18   :  { %2215 = vmatpush3.msra.mxu0 %v62_v21  ;;  %2251 = vmatprep.subr.mxu1 %v1896_v22  ;;  %v739_v18 = vld [vmem:[%s3311_s3] sm:$0xf] }
  0x19   :  { %2216 = vmatprep.subr.mxu0 %v61_v23  ;;  %2252 = vmatpush3.msra.mxu1 %v1896_v22  ;;  %v748_v19 = vld [vmem:[%s3312_s5] sm:$0xff] }
  0x1a   :  { %2217 = vmatpush3.msra.mxu0 %v61_v23  ;;  %2253 = vmatprep.subr.mxu1 %v1895_v24 }
  0x1b   :  { %2218 = vmatprep.subr.mxu0 %v60_v25  ;;  %2254 = vmatpush3.msra.mxu1 %v1895_v24  ;;  %v1948_v24 = vld [vmem:[%s3310_s2 + $0xc] sm:$0xf] }
  0x1c   :  { %2219 = vmatpush3.msra.mxu0 %v60_v25  ;;  %2255 = vmatprep.subr.mxu1 %v1894_v26 }
  0x1d   :  { %2220 = vmatprep.subr.mxu0 %v59_v27  ;;  %2256 = vmatpush3.msra.mxu1 %v1894_v26 }
  0x1e   :  { %2221 = vmatpush3.msra.mxu0 %v59_v27  ;;  %2257 = vmatprep.subr.mxu1 %v1893_v28 }
  0x1f   :  { %2222 = vmatprep.subr.mxu0 %v58_v29  ;;  %2258 = vmatpush3.msra.mxu1 %v1893_v28 }
  0x20   :  { %2223 = vmatpush3.msra.mxu0 %v58_v29  ;;  %2259 = vmatprep.subr.mxu1 %v1892_v30 }
  0x21   :  { %2224 = vmatprep.subr.mxu0 %v57_v31  ;;  %2260 = vmatpush3.msra.mxu1 %v1892_v30 }
  0x22   :  { %2261 = vmatprep.mubr.f32.mxu1 %v2752_v32  ;;  %2225 = vmatpush3.msra.mxu0 %v57_v31 }
  0x23   :  { %2226 = vmatprep.mubr.f32.mxu0 %v2752_v32  ;;  %2262 = vmatmul.mubr.f32.vlgmr.msra.gmra.mxu1 %v2757_v33 }
  0x24   :  { %2227 = vmatmul.mubr.f32.vlgmr.msra.gmra.mxu0 %v2757_v33  ;;  %2264 = vmatprep.subr.mxu0 %v2568_v34 }
  0x25   :  { %2271 = vmatprep.subr.mxu1 %v2568_v34  ;;  %2268 = vmatprep.mubr.msk.f32.mxu0 %vm2569_vm0, %v2568_v34 }
  0x26   :  { %2275 = vmatprep.mubr.msk.f32.mxu1 %vm2569_vm0, %v2568_v34  ;;  %2547 = vset.pattern.permute.xlu0 %v2570_v17 }
  0x27   :  { %742 = vperm.xlu0 %2547, %v739_v18  }
  0x2b   :  { %751 = vperm.xlu0 %2547, %v748_v19  }
  0xa2   :  { %v743_v28 = vpop.permute.xlu0 %742 }
  0xe3   :  { %v2263_v35 = vpop.f32.mrf.mxu1 }
  0xe4   :  { %v2228_v36 = vpop.f32.mrf.mxu0  ;;  %2265 = vmatpush3.msk.msra.mxu0 %vm247_vm1, %v2263_v35 }
  0xe5   :  { %2272 = vmatpush3.msk.msra.mxu1 %vm247_vm1, %v2228_v36  ;;  %v232_v39 = vpop.f32.mrf.mxu1  ;;  %2266 = vmatprep.subr.mxu0 %v2568_v34  ;;  %v752_v36 = vpop.permute.xlu0 %751 }
  0xe6   :  { %v139_v40 = vpop.f32.mrf.mxu0  ;;  %2273 = vmatprep.subr.mxu1 %v2568_v34  ;;  %2267 = vmatpush3.msra.mxu0 %v232_v39 }
  0xe7   :  { %2274 = vmatpush3.msra.mxu1 %v139_v40  ;;  %2269 = vmatmul.mubr.msk.f32.vlgmr.msra.gmra.mxu0 %vm243_vm2, %v1908_v37 }
  0xe8   :  { %2278 = vmatprep.subr.mxu0 %v1928_v38  ;;  %2276 = vmatmul.mubr.msk.f32.vlgmr.msra.gmra.mxu1 %vm243_vm2, %v148_v41 }
  0xe9   :  { %2279 = vmatpush3.msra.mxu0 %v1928_v38  ;;  %2310 = vmatprep.mubr.f32.mxu0 %v2752_v32 }
  0xea   :  { %2280 = vmatprep.subr.mxu0 %v1927_v42  ;;  %2313 = vmatprep.subr.mxu1 %v2568_v34 }
  0xeb   :  { %2281 = vmatpush3.msra.mxu0 %v1927_v42  ;;  %2317 = vmatprep.mubr.msk.f32.mxu1 %vm2569_vm0, %v2568_v34 }
  0xec   :  { %2282 = vmatprep.subr.mxu0 %v1926_v43 }
  0xed   :  { %2283 = vmatpush3.msra.mxu0 %v1926_v43  ;;  %v2571_v43 = vmov 1  }
  0xee   :  { %2284 = vmatprep.subr.mxu0 %v1925_v44  ;;  %2548 = vset.pattern.permute.xlu0 %v2571_v43 }
  0xef   :  { %2285 = vmatpush3.msra.mxu0 %v1925_v44  ;;  %v2572_v44 = vmov 2   ;;  %846 = vperm.xlu0 %2548, %v748_v19  }
  0xf0   :  { %2286 = vmatprep.subr.mxu0 %v1924_v45  ;;  %2549 = vset.pattern.permute.xlu1 %v2572_v44 }
  0xf1   :  { %2287 = vmatpush3.msra.mxu0 %v1924_v45 }
  0xf2   :  { %2288 = vmatprep.subr.mxu0 %v1923_v46 }
  0xf3   :  { %2289 = vmatpush3.msra.mxu0 %v1923_v46  ;;  %2550 = vset.pattern.permute.xlu0 %v2570_v17 }
  0xf4   :  { %2290 = vmatprep.subr.mxu0 %v1922_v47 }
  0xf5   :  { %2291 = vmatpush3.msra.mxu0 %v1922_v47 }
  0xf6   :  { %2292 = vmatprep.subr.mxu0 %v1921_v48 }
  0xf7   :  { %2293 = vmatpush3.msra.mxu0 %v1921_v48 }
  0xf8   :  { %2294 = vmatprep.subr.mxu0 %v1920_v49 }
  0xf9   :  { %2295 = vmatpush3.msra.mxu0 %v1920_v49 }
  0xfa   :  { %2296 = vmatprep.subr.mxu0 %v1919_v50 }
  0xfb   :  { %2297 = vmatpush3.msra.mxu0 %v1919_v50  ;;  %v856_v50 = vld [vmem:[%s3314_s7] sm:$0xff] }
  0xfc   :  { %2298 = vmatprep.subr.mxu0 %v1918_v51  ;;  %859 = vperm.xlu0 %2550, %v856_v50  }
  0xfd   :  { %2299 = vmatpush3.msra.mxu0 %v1918_v51 }
  0xfe   :  { %2300 = vmatprep.subr.mxu0 %v1917_v52 }
  0xff   :  { %2301 = vmatpush3.msra.mxu0 %v1917_v52 }
 0x100   :  { %2302 = vmatprep.subr.mxu0 %v1916_v53  ;;  %2551 = vset.pattern.permute.xlu0 %v2571_v43 }
 0x101   :  { %2303 = vmatpush3.msra.mxu0 %v1916_v53 }
 0x102   :  { %2304 = vmatprep.subr.mxu0 %v1915_v54 }
 0x103   :  { %2305 = vmatpush3.msra.mxu0 %v1915_v54 }
 0x104   :  { %2306 = vmatprep.subr.mxu0 %v1914_v55 }
 0x105   :  { %2307 = vmatpush3.msra.mxu0 %v1914_v55 }
 0x106   :  { %2308 = vmatprep.subr.mxu0 %v1913_v56 }
 0x107   :  { %2309 = vmatpush3.msra.mxu0 %v1913_v56 }
 0x108   :  { %2311 = vmatmul.mubr.f32.vlgmr.msra.gmra.mxu0 %v2757_v33  ;;  %2355 = vmatprep.subr.mxu0 %v2568_v34 }
 0x109   :  { %2359 = vmatprep.mubr.msk.f32.mxu0 %vm2569_vm0, %v2568_v34 }
 0x16a   :  { %v847_v55 = vpop.permute.xlu0 %846 }
 0x1a7   :  { %v317_v57 = vpop.f32.mrf.mxu0 }
 0x1a8   :  { %v393_v58 = vpop.f32.mrf.mxu1 }
 0x1a9   :  { %v2837_v59 = vadd.f32 %v393_v58, %v317_v57  ;;  %v2270_v60 = vpop.f32.mrf.mxu0 }
 0x1aa   :  { %v2277_v61 = vpop.f32.mrf.mxu1  ;;  %v855_v60 = vld [vmem:[%s3315_s6] sm:$0xff] }
 0x1ab   :  { %v860_v61 = vpop.permute.xlu0 %859 }
 0x1c8   :  { %v2312_v62 = vpop.f32.mrf.mxu0 }
 0x1c9   :  { %2314 = vmatpush3.msk.msra.mxu1 %vm247_vm1, %v2312_v62 }
 0x1ca   :  { %v480_v1 = vpop.f32.mrf.mxu0  ;;  %2315 = vmatprep.subr.mxu1 %v2568_v34 }
 0x1cb   :  { %2316 = vmatpush3.msra.mxu1 %v480_v1 }
 0x1cc   :  { %2318 = vmatmul.mubr.msk.f32.vlgmr.msra.gmra.mxu1 %vm243_vm2, %v1929_v63  ;;  %2320 = vmatprep.subr.mxu1 %v1947_v0 }
 0x1cd   :  { %2321 = vmatpush3.msra.mxu1 %v1947_v0  ;;  %2352 = vmatprep.mubr.f32.mxu1 %v2752_v32  ;;  %v747_v32 = vld [vmem:[%s3313_s4] sm:$0xff] }
 0x1ce   :  { %2322 = vmatprep.subr.mxu1 %v1946_v2 }
 0x1cf   :  { %2323 = vmatpush3.msra.mxu1 %v1946_v2 }
 0x1d0   :  { %2324 = vmatprep.subr.mxu1 %v1945_v3 }
 0x1d1   :  { %2325 = vmatpush3.msra.mxu1 %v1945_v3 }
 0x1d2   :  { %2326 = vmatprep.subr.mxu1 %v1944_v4 }
 0x1d3   :  { %2327 = vmatpush3.msra.mxu1 %v1944_v4 }
 0x1d4   :  { %2328 = vmatprep.subr.mxu1 %v1943_v5 }
 0x1d5   :  { %2329 = vmatpush3.msra.mxu1 %v1943_v5 }
 0x1d6   :  { %2330 = vmatprep.subr.mxu1 %v1942_v6 }
 0x1d7   :  { %2331 = vmatpush3.msra.mxu1 %v1942_v6 }
 0x1d8   :  { %2332 = vmatprep.subr.mxu1 %v1941_v7 }
 0x1d9   :  { %2333 = vmatpush3.msra.mxu1 %v1941_v7 }
 0x1da   :  { %2334 = vmatprep.subr.mxu1 %v1940_v8 }
 0x1db   :  { %2335 = vmatpush3.msra.mxu1 %v1940_v8  ;;  %v962_v8 = vld [vmem:[%s3316_s9] sm:$0xff] }
 0x1dc   :  { %2336 = vmatprep.subr.mxu1 %v1939_v9 }
 0x1dd   :  { %2337 = vmatpush3.msra.mxu1 %v1939_v9 }
 0x1de   :  { %2338 = vmatprep.subr.mxu1 %v1938_v10 }
 0x1df   :  { %2339 = vmatpush3.msra.mxu1 %v1938_v10 }
 0x1e0   :  { %2340 = vmatprep.subr.mxu1 %v1937_v11 }
 0x1e1   :  { %2341 = vmatpush3.msra.mxu1 %v1937_v11 }
 0x1e2   :  { %2342 = vmatprep.subr.mxu1 %v1936_v12 }
 0x1e3   :  { %2343 = vmatpush3.msra.mxu1 %v1936_v12 }
 0x1e4   :  { %2344 = vmatprep.subr.mxu1 %v1935_v13 }
 0x1e5   :  { %2345 = vmatpush3.msra.mxu1 %v1935_v13 }
 0x1e6   :  { %2346 = vmatprep.subr.mxu1 %v1934_v14 }
 0x1e7   :  { %2347 = vmatpush3.msra.mxu1 %v1934_v14 }
 0x1e8   :  { %2348 = vmatprep.subr.mxu1 %v1933_v15 }
 0x1e9   :  { %2349 = vmatpush3.msra.mxu1 %v1933_v15 }
 0x1ea   :  { %2350 = vmatprep.subr.mxu1 %v1932_v16 }
 0x1eb   :  { %2351 = vmatpush3.msra.mxu1 %v1932_v16 }
 0x1ec   :  { %2353 = vmatmul.mubr.f32.vlgmr.msra.gmra.mxu1 %v2757_v33  ;;  %2367 = vmatprep.subr.mxu1 %v2568_v34  ;;  %v50_v33 = vlaneseq }
 0x1ed   :  { %2369 = vmatprep.mubr.msk.f32.mxu1 %vm2569_vm0, %v2568_v34 }
 0x1ee   :  { %v51_v35 = vand.u32 127, %v50_v33 }
 0x1f0   :  { %vm52_vm4 = vcmp.lt.s32.totalorder %v51_v35, 98 }
 0x1f1   :  { %v2924_v40 = vsel %vm52_vm4, 1.0, %v2568_v34 }
 0x28c   :  { %v563_v20 = vpop.f32.mrf.mxu1 }
 0x28d   :  { %v567_v21 = vadd.f32 %v563_v20, %v2837_v59 }
 0x28e   :  { %v2319_v22 = vpop.f32.mrf.mxu1 }
 0x2ac   :  { %v2354_v23 = vpop.f32.mrf.mxu1 }
 0x2ad   :  { %2356 = vmatpush3.msk.msra.mxu0 %vm247_vm1, %v2354_v23 }
 0x2ae   :  { %v651_v25 = vpop.f32.mrf.mxu1  ;;  %2357 = vmatprep.subr.mxu0 %v2568_v34 }
 0x2af   :  { %2358 = vmatpush3.msra.mxu0 %v651_v25 }
 0x2b0   :  { %2360 = vmatmul.mubr.msk.f32.vlgmr.msra.gmra.mxu0 %vm243_vm2, %v1948_v24  ;;  %2362 = vmatprep.subr.mxu0 %v2568_v34 }
 0x2b1   :  { %2364 = vmatprep.mubr.msk.f32.mxu0 %vm2569_vm0, %v2568_v34 }
 0x370   :  { %v734_v26 = vpop.f32.mrf.mxu0 }
 0x371   :  { %v738_v27 = vadd.f32 %v734_v26, %v567_v21 }
 0x372   :  { %v2361_v29 = vpop.f32.mrf.mxu0 }
 0x373   :  { %v745_v30 = vadd.f32 %v743_v28, %v738_v27 }
 0x375   :  { %v746_v31 = vmax.f32 %v745_v30, 0.0 }
 0x377   :  { %2363 = vmatpush3.msk.msra.mxu0 %vm247_vm1, %v746_v31  ;;  %v1066_v31 = vld [vmem:[%s3319_s11] sm:$0xf] }
 0x378   :  { %2365 = vmatmul.mubr.msk.f32.vlgmr.msra.gmra.mxu0 %vm754_vm3, %v747_v32  ;;  %2372 = vmatprep.subr.mxu0 %v2568_v34 }
 0x379   :  { %2374 = vmatprep.mubr.msk.f32.mxu0 %vm2569_vm0, %v2568_v34 }
 0x438   :  { %v827_v37 = vpop.f32.mrf.mxu0 }
 0x439   :  { %v828_v38 = vadd.f32 %v827_v37, %v752_v36 }
 0x43a   :  { %v2366_v39 = vpop.f32.mrf.mxu0 }
 0x43b   :  { %v831_v41 = vmax.f32 %v828_v38, 0.0 }
 0x43d   :  { %v832_v42 = vmul.f32 %v2924_v40, %v831_v41 }
 0x43f   :  { %833 = vadd.xlane.f32.xlu1 %v832_v42 }
 0x4c8   :  { %v834_v45 = vpop.xlane.xlu1 %833 }
 0x4c9   :  { %v835_v46 = vmul.f32 0.010204081, %v834_v45  ;;  %v1065_v45 = vld [vmem:[%s3320_s10] sm:$0xf] }
 0x4cb   :  { %v836_v47 = vsub.f32 %v831_v41, %v835_v46 }
 0x4cd   :  { %v837_v48 = vmul.f32 %v2924_v40, %v836_v47 }
 0x4cf   :  { %v838_v49 = vmul.f32 %v837_v48, %v837_v48 }
 0x4d1   :  { %839 = vadd.xlane.f32.xlu1 %v838_v49 }
 0x4e2   :  { %851 = vperm.xlu1 %2549, %v748_v19   ;;  %v961_v19 = vld [vmem:[%s3317_s8] sm:$0xff] }
 0x55a   :  { %v840_v51 = vpop.xlane.xlu1 %839 }
 0x55b   :  { %v841_v52 = vmul.f32 0.010204081, %v840_v51 }
 0x55d   :  { %v842_v53 = vadd.f32 1e-05, %v841_v52  ;;  %v1186_v52 = vld [vmem:[%s3321_s12 + $0x78] sm:$0xff] }
 0x55e   :  { %v852_v57 = vpop.permute.xlu1 %851 }
 0x55f   :  { %2560 = vrsqrt.f32 %v842_v53  ;;  %v1971_v53 = vld [vmem:[%s3321_s12 + $0xf8] sm:$0xff] }
 0x56c   :  { %v2561_v54 = vpop.eup %2560 }
 0x56d   :  { %v844_v56 = vmul.f32 %v2561_v54, %v837_v48  ;;  %v1185_v54 = vld [vmem:[%s3321_s12 + $0x70] sm:$0xff] }
 0x56f   :  { %v849_v58 = vmul.f32 %v847_v55, %v844_v56  ;;  %v1970_v55 = vld [vmem:[%s3321_s12 + $0xf0] sm:$0xff]  ;;  %v1184_v56 = vld [vmem:[%s3321_s12 + $0x68] sm:$0xff] }
 0x571   :  { %v854_v59 = vadd.f32 %v852_v57, %v849_v58  ;;  %v1183_v57 = vld [vmem:[%s3321_s12 + $0x60] sm:$0xff] }
 0x572   :  { %v1968_v58 = vld [vmem:[%s3321_s12 + $0xe0] sm:$0xff] }
 0x573   :  { %2368 = vmatpush3.msra.mxu1 %v854_v59 }
 0x574   :  { %2370 = vmatmul.mubr.msk.f32.vlgmr.msra.gmra.mxu1 %vm862_vm5, %v855_v60  ;;  %2377 = vmatprep.subr.mxu1 %v2568_v34 }
 0x575   :  { %2379 = vmatprep.mubr.msk.f32.mxu1 %vm2569_vm0, %v2568_v34 }
 0x634   :  { %v932_v62 = vpop.f32.mrf.mxu1 }
 0x635   :  { %v933_v63 = vadd.f32 %v932_v62, %v860_v61 }
 0x636   :  { %v2371_v0 = vpop.f32.mrf.mxu1 }
 0x637   :  { %v936_v1 = vmax.f32 %v933_v63, 0.0 }
 0x639   :  { %v937_v2 = vmul.f32 %v2924_v40, %v936_v1 }
 0x63b   :  { %938 = vadd.xlane.f32.xlu0 %v937_v2  ;;  %v1966_v2 = vld [vmem:[%s3321_s12 + $0xd0] sm:$0xff] }
 0x651   :  { %951 = vperm.xlu0 %2551, %v856_v50  }
 0x655   :  { %2554 = vset.pattern.permute.xlu0 %v2572_v44 }
 0x6c4   :  { %v939_v3 = vpop.xlane.xlu0 %938 }
 0x6c5   :  { %v940_v4 = vmul.f32 0.010204081, %v939_v3  ;;  %v1180_v3 = vld [vmem:[%s3321_s12 + $0x48] sm:$0xff] }
 0x6c7   :  { %v941_v5 = vsub.f32 %v936_v1, %v940_v4  ;;  %v1182_v1 = vld [vmem:[%s3321_s12 + $0x58] sm:$0xff]  ;;  %v1965_v4 = vld [vmem:[%s3321_s12 + $0xc8] sm:$0xff] }
 0x6c9   :  { %v942_v6 = vmul.f32 %v2924_v40, %v941_v5  ;;  %v1179_v5 = vld [vmem:[%s3321_s12 + $0x40] sm:$0xff] }
 0x6cb   :  { %v943_v7 = vmul.f32 %v942_v6, %v942_v6 }
 0x6cc   :  { %v952_v13 = vpop.permute.xlu0 %951 }
 0x6cd   :  { %944 = vadd.xlane.f32.xlu1 %v943_v7  ;;  %v1178_v7 = vld [vmem:[%s3321_s12 + $0x38] sm:$0xff] }
 0x6de   :  { %956 = vperm.xlu1 %2549, %v856_v50  }
 0x6e2   :  { %2552 = vset.pattern.permute.xlu1 %v2570_v17 }
 0x6e3   :  { %965 = vperm.xlu1 %2552, %v962_v8  }
 0x6e7   :  { %2553 = vset.pattern.permute.xlu1 %v2571_v43 }
 0x756   :  { %v945_v9 = vpop.xlane.xlu1 %944 }
 0x757   :  { %v946_v10 = vmul.f32 0.010204081, %v945_v9  ;;  %v1177_v9 = vld [vmem:[%s3321_s12 + $0x30] sm:$0xff] }
 0x759   :  { %v947_v11 = vadd.f32 1e-05, %v946_v10  ;;  %v1962_v10 = vld [vmem:[%s3321_s12 + $0xb0] sm:$0xff] }
 0x75a   :  { %v957_v16 = vpop.permute.xlu1 %956 }
 0x75b   :  { %2562 = vrsqrt.f32 %v947_v11  ;;  %v1176_v11 = vld [vmem:[%s3321_s12 + $0x28] sm:$0xff] }
 0x75e   :  { %v966_v20 = vpop.permute.xlu1 %965 }
 0x768   :  { %v2563_v12 = vpop.eup %2562 }
 0x769   :  { %v949_v14 = vmul.f32 %v2563_v12, %v942_v6  ;;  %v1964_v6 = vld [vmem:[%s3321_s12 + $0xc0] sm:$0xff]  ;;  %v1961_v12 = vld [vmem:[%s3321_s12 + $0xa8] sm:$0xff] }
 0x76b   :  { %v954_v15 = vmul.f32 %v952_v13, %v949_v14  ;;  %v1175_v13 = vld [vmem:[%s3321_s12 + $0x20] sm:$0xff] }
 0x76c   :  { %v1960_v14 = vld [vmem:[%s3321_s12 + $0xa0] sm:$0xff] }
 0x76d   :  { %v959_v18 = vadd.f32 %v957_v16, %v954_v15  ;;  %v1174_v15 = vld [vmem:[%s3321_s12 + $0x18] sm:$0xff] }
 0x76e   :  { %v1959_v16 = vld [vmem:[%s3321_s12 + $0x98] sm:$0xff] }
 0x76f   :  { %960 = vst [vmem:[%s3318_s15] sm:$0xff] %v959_v18  ;;  %2373 = vmatpush3.msra.mxu0 %v959_v18  ;;  %v1173_v18 = vld [vmem:[%s3321_s12 + $0x10] sm:$0xff] }
 0x770   :  { %2375 = vmatmul.mubr.msk.f32.vlgmr.msra.gmra.mxu0 %vm862_vm5, %v961_v19  ;;  %2382 = vmatprep.subr.mxu0 %v2568_v34  ;;  %v1958_v19 = vld [vmem:[%s3321_s12 + $0x90] sm:$0xff] }
 0x771   :  { %2414 = vmatprep.mubr.msk.f32.mxu0 %vm2569_vm0, %v2568_v34  ;;  %2383 = vmatpush3.msra.mxu0 %v1186_v52  ;;  %v1987_v52 = vld [vmem:[%s3321_s12 + $0x138] sm:$0xff] }
 0x772   :  { %2384 = vmatprep.subr.mxu0 %v2568_v34 }
 0x773   :  { %2385 = vmatpush3.msra.mxu0 %v1185_v54  ;;  %v1985_v54 = vld [vmem:[%s3321_s12 + $0x128] sm:$0xff] }
 0x774   :  { %2386 = vmatprep.subr.mxu0 %v2568_v34 }
 0x775   :  { %2387 = vmatpush3.msra.mxu0 %v1184_v56  ;;  %v1983_v56 = vld [vmem:[%s3321_s12 + $0x118] sm:$0xff] }
 0x776   :  { %2388 = vmatprep.subr.mxu0 %v2568_v34 }
 0x777   :  { %2389 = vmatpush3.msra.mxu0 %v1183_v57  ;;  %v1981_v57 = vld [vmem:[%s3321_s12 + $0x108] sm:$0xff] }
 0x778   :  { %2390 = vmatprep.subr.mxu0 %v2568_v34 }
 0x779   :  { %2391 = vmatpush3.msra.mxu0 %v1182_v1  ;;  %v1997_v1 = vld [vmem:[%s3322_s13 + $0x28] sm:$0xf] }
 0x77a   :  { %2392 = vmatprep.subr.mxu0 %v2568_v34 }
 0x830   :  { %v1037_v21 = vpop.f32.mrf.mxu0 }
 0x831   :  { %v1038_v22 = vadd.f32 %v1037_v21, %v966_v20  ;;  %v1172_v20 = vld [vmem:[%s3321_s12 + $0x8] sm:$0xff] }
 0x832   :  { %v2376_v23 = vpop.f32.mrf.mxu0  ;;  %v1957_v21 = vld [vmem:[%s3321_s12 + $0x88] sm:$0xff] }
 0x833   :  { %v1041_v24 = vmax.f32 %v1038_v22, 0.0  ;;  %v1171_v22 = vld [vmem:[%s3321_s12] sm:$0xff] }
 0x834   :  { %v1956_v23 = vld [vmem:[%s3321_s12 + $0x80] sm:$0xff] }
 0x835   :  { %v1042_v25 = vmul.f32 %v2924_v40, %v1041_v24 }
 0x837   :  { %1043 = vadd.xlane.f32.xlu1 %v1042_v25 }
 0x848   :  { %1056 = vperm.xlu1 %2553, %v962_v8  }
 0x84c   :  { %2555 = vset.pattern.permute.xlu1 %v2570_v17 }
 0x84d   :  { %1069 = vperm.xlu1 %2555, %v1066_v31  }
 0x851   :  { %2556 = vset.pattern.permute.xlu1 %v2571_v43 }
 0x8c0   :  { %v1044_v26 = vpop.xlane.xlu1 %1043 }
 0x8c1   :  { %v1045_v27 = vmul.f32 0.010204081, %v1044_v26 }
 0x8c3   :  { %v1046_v28 = vsub.f32 %v1041_v24, %v1045_v27 }
 0x8c4   :  { %v1057_v37 = vpop.permute.xlu1 %1056 }
 0x8c5   :  { %v1047_v29 = vmul.f32 %v2924_v40, %v1046_v28 }
 0x8c7   :  { %v1048_v30 = vmul.f32 %v1047_v29, %v1047_v29 }
 0x8c8   :  { %v1070_v43 = vpop.permute.xlu1 %1069 }
 0x8c9   :  { %1049 = vadd.xlane.f32.xlu0 %v1048_v30 }
 0x8df   :  { %1061 = vperm.xlu0 %2554, %v962_v8   ;;  %v1963_v8 = vld [vmem:[%s3321_s12 + $0xb8] sm:$0xff] }
 0x8e3   :  { %2559 = vset.pattern.permute.xlu0 %v2570_v17 }
 0x952   :  { %v1050_v32 = vpop.xlane.xlu0 %1049 }
 0x953   :  { %v1051_v33 = vmul.f32 0.010204081, %v1050_v32 }
 0x955   :  { %v1052_v35 = vadd.f32 1e-05, %v1051_v33  ;;  %v1972_v33 = vld [vmem:[%s3322_s13 + $0x10] sm:$0xff] }
 0x957   :  { %2564 = vrsqrt.f32 %v1052_v35  ;;  %v1257_v35 = vld [vmem:[%s3322_s13] sm:$0xff] }
 0x95a   :  { %v1062_v39 = vpop.permute.xlu0 %1061 }
 0x964   :  { %v2565_v36 = vpop.eup %2564 }
 0x965   :  { %v1054_v38 = vmul.f32 %v2565_v36, %v1047_v29 }
 0x967   :  { %v1059_v41 = vmul.f32 %v1057_v37, %v1054_v38  ;;  %v1973_v38 = vld [vmem:[%s3322_s13 + $0x18] sm:$0xf] }
 0x969   :  { %v1064_v42 = vadd.f32 %v1062_v39, %v1059_v41  ;;  %v1258_v39 = vld [vmem:[%s3322_s13 + $0x8] sm:$0xf] }
 0x96b   :  { %2378 = vmatpush3.msra.mxu1 %v1064_v42 }
 0x96c   :  { %2380 = vmatmul.mubr.msk.f32.vlgmr.msra.gmra.mxu1 %vm862_vm5, %v1065_v45  ;;  %2417 = vmatprep.subr.mxu1 %v2568_v34  ;;  %v1995_v45 = vld [vmem:[%s3321_s12 + $0x178] sm:$0xff] }
 0x96d   :  { %2449 = vmatprep.mubr.msk.f32.mxu1 %vm2569_vm0, %v2568_v34  ;;  %2418 = vmatpush3.msra.mxu1 %v1971_v53  ;;  %v1986_v53 = vld [vmem:[%s3321_s12 + $0x130] sm:$0xff] }
 0x96e   :  { %2419 = vmatprep.subr.mxu1 %v2568_v34 }
 0x96f   :  { %2420 = vmatpush3.msra.mxu1 %v1970_v55  ;;  %v1984_v55 = vld [vmem:[%s3321_s12 + $0x120] sm:$0xff] }
 0x970   :  { %2421 = vmatprep.subr.mxu1 %v2568_v34 }
 0xa2c   :  { %v1141_v46 = vpop.f32.mrf.mxu1 }
 0xa2d   :  { %v1142_v47 = vadd.f32 %v1141_v46, %v1070_v43  ;;  %v1994_v43 = vld [vmem:[%s3321_s12 + $0x170] sm:$0xff]  ;;  %v1993_v46 = vld [vmem:[%s3321_s12 + $0x168] sm:$0xff] }
 0xa2e   :  { %v2381_v48 = vpop.f32.mrf.mxu1 }
 0xa2f   :  { %v1145_v49 = vmax.f32 %v1142_v47, 0.0  ;;  %v1992_v47 = vld [vmem:[%s3321_s12 + $0x160] sm:$0xff]  ;;  %v1991_v48 = vld [vmem:[%s3321_s12 + $0x158] sm:$0xff] }
 0xa31   :  { %v1146_v50 = vmul.f32 %v2924_v40, %v1145_v49 }
 0xa33   :  { %v1147_v51 = vsel %vm247_vm1, %v1146_v50, 0.0  ;;  %v1989_v50 = vld [vmem:[%s3321_s12 + $0x148] sm:$0xff] }
 0xa34   :  { %1148 = vadd.xlane.f32.xlu1 %v1147_v51  ;;  %v1988_v51 = vld [vmem:[%s3321_s12 + $0x140] sm:$0xff] }
 0xa45   :  { %1162 = vperm.xlu1 %2556, %v1066_v31  }
 0xa49   :  { %2557 = vset.pattern.permute.xlu1 %v2572_v44  ;;  %v1969_v44 = vld [vmem:[%s3321_s12 + $0xe8] sm:$0xff] }
 0xa4a   :  { %1167 = vperm.xlu1 %2557, %v1066_v31   ;;  %2422 = vmatpush3.msra.mxu1 %v1969_v44  ;;  %v1982_v44 = vld [vmem:[%s3321_s12 + $0x110] sm:$0xff] }
 0xa4b   :  { %2423 = vmatprep.subr.mxu1 %v2568_v34 }
 0xa4c   :  { %2424 = vmatpush3.msra.mxu1 %v1968_v58  ;;  %v1980_v58 = vld [vmem:[%s3321_s12 + $0x100] sm:$0xff] }
 0xa4d   :  { %2425 = vmatprep.subr.mxu1 %v2568_v34 }
 0xa4e   :  { %2558 = vset.pattern.permute.xlu1 %v2570_v17  ;;  %v1967_v17 = vld [vmem:[%s3321_s12 + $0xd8] sm:$0xff] }
 0xa4f   :  { %2426 = vmatpush3.msra.mxu1 %v1967_v17  ;;  %v2016_v17 = vld [vmem:[%s3321_s12 + $0x1f8] sm:$0xff] }
 0xa50   :  { %2427 = vmatprep.subr.mxu1 %v2568_v34 }
 0xa51   :  { %2428 = vmatpush3.msra.mxu1 %v1966_v2  ;;  %v2015_v2 = vld [vmem:[%s3321_s12 + $0x1f0] sm:$0xff] }
 0xa52   :  { %2429 = vmatprep.subr.mxu1 %v2568_v34 }
 0xa53   :  { %2430 = vmatpush3.msra.mxu1 %v1965_v4  ;;  %v2013_v4 = vld [vmem:[%s3321_s12 + $0x1e0] sm:$0xff] }
 0xa54   :  { %2431 = vmatprep.subr.mxu1 %v2568_v34 }
 0xa55   :  { %2432 = vmatpush3.msra.mxu1 %v1964_v6  ;;  %v2011_v6 = vld [vmem:[%s3321_s12 + $0x1d0] sm:$0xff] }
 0xa56   :  { %2433 = vmatprep.subr.mxu1 %v2568_v34 }
 0xa57   :  { %2434 = vmatpush3.msra.mxu1 %v1963_v8  ;;  %v2009_v8 = vld [vmem:[%s3321_s12 + $0x1c0] sm:$0xff] }
 0xa58   :  { %2435 = vmatprep.subr.mxu1 %v2568_v34 }
 0xa59   :  { %2436 = vmatpush3.msra.mxu1 %v1962_v10  ;;  %v2007_v10 = vld [vmem:[%s3321_s12 + $0x1b0] sm:$0xff] }
 0xa5a   :  { %2437 = vmatprep.subr.mxu1 %v2568_v34 }
 0xa5b   :  { %2438 = vmatpush3.msra.mxu1 %v1961_v12  ;;  %v2005_v12 = vld [vmem:[%s3321_s12 + $0x1a0] sm:$0xff] }
 0xa5c   :  { %2439 = vmatprep.subr.mxu1 %v2568_v34 }
 0xa5d   :  { %2440 = vmatpush3.msra.mxu1 %v1960_v14  ;;  %v2003_v14 = vld [vmem:[%s3321_s12 + $0x190] sm:$0xff] }
 0xa5e   :  { %2441 = vmatprep.subr.mxu1 %v2568_v34 }
 0xa5f   :  { %2442 = vmatpush3.msra.mxu1 %v1959_v16  ;;  %v2001_v16 = vld [vmem:[%s3321_s12 + $0x180] sm:$0xff] }
 0xa60   :  { %2443 = vmatprep.subr.mxu1 %v2568_v34 }
 0xa61   :  { %2444 = vmatpush3.msra.mxu1 %v1958_v19  ;;  %v1869_v19 = vld [vmem:[%s3323_s14] sm:$0xff] }
 0xa62   :  { %2445 = vmatprep.subr.mxu1 %v2568_v34  ;;  %1873 = vperm.xlu1 %2558, %v1869_v19  }
 0xa63   :  { %2446 = vmatpush3.msra.mxu1 %v1957_v21 }
 0xa64   :  { %2447 = vmatprep.subr.mxu1 %v2568_v34 }
 0xa65   :  { %2448 = vmatpush3.msra.mxu1 %v1956_v23 }
 0xabd   :  { %v1149_v59 = vpop.xlane.xlu1 %1148 }
 0xabe   :  { %v1150_v60 = vmul.f32 0.010204081, %v1149_v59  ;;  %v1996_v59 = vld [vmem:[%s3322_s13 + $0x20] sm:$0xff] }
 0xac0   :  { %v1151_v61 = vsub.f32 %v1145_v49, %v1150_v60  ;;  %v1990_v49 = vld [vmem:[%s3321_s12 + $0x150] sm:$0xff] }
 0xac1   :  { %v1163_v27 = vpop.permute.xlu1 %1162 }
 0xac2   :  { %v3012_v62 = vmul.f32 %v2924_v40, %v1151_v61  ;;  %v1181_v40 = vld [vmem:[%s3321_s12 + $0x50] sm:$0xff] }
 0xac3   :  { %2393 = vmatpush3.msra.mxu0 %v1181_v40 }
 0xac4   :  { %v1153_v63 = vmul.f32 %v3012_v62, %v3012_v62  ;;  %2394 = vmatprep.subr.mxu0 %v2568_v34 }
 0xac5   :  { %2395 = vmatpush3.msra.mxu0 %v1180_v3  ;;  %v1168_v30 = vpop.permute.xlu1 %1167  ;;  %v2014_v3 = vld [vmem:[%s3321_s12 + $0x1e8] sm:$0xff] }
 0xac6   :  { %v1154_v0 = vsel %vm247_vm1, %v1153_v63, 0.0  ;;  %2396 = vmatprep.subr.mxu0 %v2568_v34 }
 0xac7   :  { %1155 = vadd.xlane.f32.xlu0 %v1154_v0  ;;  %2397 = vmatpush3.msra.mxu0 %v1179_v5  ;;  %v2012_v5 = vld [vmem:[%s3321_s12 + $0x1d8] sm:$0xff] }
 0xac8   :  { %2398 = vmatprep.subr.mxu0 %v2568_v34 }
 0xac9   :  { %2399 = vmatpush3.msra.mxu0 %v1178_v7  ;;  %v2010_v7 = vld [vmem:[%s3321_s12 + $0x1c8] sm:$0xff] }
 0xaca   :  { %2400 = vmatprep.subr.mxu0 %v2568_v34 }
 0xacb   :  { %2401 = vmatpush3.msra.mxu0 %v1177_v9  ;;  %v2008_v9 = vld [vmem:[%s3321_s12 + $0x1b8] sm:$0xff] }
 0xacc   :  { %2402 = vmatprep.subr.mxu0 %v2568_v34 }
 0xacd   :  { %2403 = vmatpush3.msra.mxu0 %v1176_v11  ;;  %v2006_v11 = vld [vmem:[%s3321_s12 + $0x1a8] sm:$0xff] }
 0xace   :  { %2404 = vmatprep.subr.mxu0 %v2568_v34 }
 0xacf   :  { %2405 = vmatpush3.msra.mxu0 %v1175_v13  ;;  %v2004_v13 = vld [vmem:[%s3321_s12 + $0x198] sm:$0xff] }
 0xad0   :  { %2406 = vmatprep.subr.mxu0 %v2568_v34 }
 0xad1   :  { %2407 = vmatpush3.msra.mxu0 %v1174_v15  ;;  %v2002_v15 = vld [vmem:[%s3321_s12 + $0x188] sm:$0xff] }
 0xad2   :  { %2408 = vmatprep.subr.mxu0 %v2568_v34 }
 0xad3   :  { %2409 = vmatpush3.msra.mxu0 %v1173_v18  ;;  %v2017_v18 = vld [vmem:[%s3322_s13 + $0x30] sm:$0xff] }
 0xad4   :  { %2410 = vmatprep.subr.mxu0 %v2568_v34 }
 0xad5   :  { %2411 = vmatpush3.msra.mxu0 %v1172_v20  ;;  %v1870_v20 = vld [vmem:[%s3323_s14 + $0x8] sm:$0xf] }
 0xad6   :  { %2412 = vmatprep.subr.mxu0 %v2568_v34  ;;  %1878 = vperm.xlu1 %2558, %v1870_v20  }
 0xad7   :  { %2413 = vmatpush3.msra.mxu0 %v1171_v22 }
 0xb50   :  { %v1156_v24 = vpop.xlane.xlu0 %1155 }
 0xb51   :  { %v1157_v25 = vmul.f32 0.010204081, %v1156_v24 }
 0xb53   :  { %v1158_v26 = vadd.f32 1e-05, %v1157_v25 }
 0xb55   :  { %2566 = vrsqrt.f32 %v1158_v26 }
 0xb62   :  { %v2567_v28 = vpop.eup %2566 }
 0xb63   :  { %v1160_v29 = vmul.f32 %v2567_v28, %v3012_v62 }
 0xb65   :  { %v1165_v31 = vmul.f32 %v1163_v27, %v1160_v29  ;;  %v2018_v27 = vld [vmem:[%s3322_s13 + $0x38] sm:$0xf]  ;;  %v1874_v29 = vpop.permute.xlu1 %1873 }
 0xb67   :  { %v3112_v32 = vadd.f32 %v1168_v30, %v1165_v31 }
 0xb69   :  { %2415 = vmatmul.mubr.f32.vlgmr.msra.gmra.mxu0 %v3112_v32  ;;  %2450 = vmatmul.mubr.f32.vlgmr.msra.gmra.mxu1 %v3112_v32 }
 0xb6a   :  { %2454 = vmatprep.mubr.msk.f32.mxu0 %vm754_vm3, %v1972_v33  ;;  %2459 = vmatprep.mubr.msk.f32.mxu1 %vm754_vm3, %v1257_v35 }
 0xc29   :  { %v1253_v36 = vpop.f32.mrf.mxu0  ;;  %v1342_v37 = vpop.f32.mrf.mxu1 }
 0xc2a   :  { %2452 = vmatprep.subr.msk.mxu0 %vm247_vm1, %v1342_v37  ;;  %2457 = vmatprep.subr.msk.mxu1 %vm247_vm1, %v1253_v36 }
 0xc2b   :  { %v2416_v41 = vpop.f32.mrf.mxu0  ;;  %v2451_v42 = vpop.f32.mrf.mxu1  ;;  %2453 = vmatpush3.msk.msra.mxu0 %vm247_vm1, %v1342_v37  ;;  %2458 = vmatpush3.msk.msra.mxu1 %vm247_vm1, %v1253_v36 }
 0xc2c   :  { %2455 = vmatmul.mubr.msk.f32.vlgmr.msra.gmra.mxu0 %vm754_vm3, %v1973_v38  ;;  %2460 = vmatmul.mubr.msk.f32.vlgmr.msra.gmra.mxu1 %vm754_vm3, %v1258_v39 }
 0xc2d   :  { %2462 = vmatprep.subr.mxu0 %v2568_v34  ;;  %2494 = vmatprep.mubr.msk.f32.mxu0 %vm2569_vm0, %v2568_v34 }
 0xc2e   :  { %2463 = vmatpush3.msra.mxu0 %v1995_v45  ;;  %2499 = vmatprep.mubr.msk.f32.mxu1 %vm754_vm3, %v1996_v59 }
 0xc2f   :  { %2464 = vmatprep.subr.mxu0 %v2568_v34 }
 0xc30   :  { %2465 = vmatpush3.msra.mxu0 %v1994_v43 }
 0xc31   :  { %2466 = vmatprep.subr.mxu0 %v2568_v34 }
 0xc32   :  { %2467 = vmatpush3.msra.mxu0 %v1993_v46 }
 0xc33   :  { %2468 = vmatprep.subr.mxu0 %v2568_v34 }
 0xc34   :  { %2469 = vmatpush3.msra.mxu0 %v1992_v47 }
 0xc35   :  { %2470 = vmatprep.subr.mxu0 %v2568_v34 }
 0xc36   :  { %2471 = vmatpush3.msra.mxu0 %v1991_v48 }
 0xc37   :  { %2472 = vmatprep.subr.mxu0 %v2568_v34 }
 0xc38   :  { %2473 = vmatpush3.msra.mxu0 %v1990_v49 }
 0xc39   :  { %2474 = vmatprep.subr.mxu0 %v2568_v34 }
 0xc3a   :  { %2475 = vmatpush3.msra.mxu0 %v1989_v50 }
 0xc3b   :  { %2476 = vmatprep.subr.mxu0 %v2568_v34 }
 0xc3c   :  { %2477 = vmatpush3.msra.mxu0 %v1988_v51 }
 0xc3d   :  { %2478 = vmatprep.subr.mxu0 %v2568_v34 }
 0xc3e   :  { %2479 = vmatpush3.msra.mxu0 %v1987_v52 }
 0xc3f   :  { %2480 = vmatprep.subr.mxu0 %v2568_v34 }
 0xc40   :  { %2481 = vmatpush3.msra.mxu0 %v1986_v53 }
 0xc41   :  { %2482 = vmatprep.subr.mxu0 %v2568_v34 }
 0xc42   :  { %2483 = vmatpush3.msra.mxu0 %v1985_v54 }
 0xc43   :  { %2484 = vmatprep.subr.mxu0 %v2568_v34 }
 0xc44   :  { %2485 = vmatpush3.msra.mxu0 %v1984_v55 }
 0xc45   :  { %2486 = vmatprep.subr.mxu0 %v2568_v34 }
 0xc46   :  { %2487 = vmatpush3.msra.mxu0 %v1983_v56 }
 0xc47   :  { %2488 = vmatprep.subr.mxu0 %v2568_v34 }
 0xc48   :  { %2489 = vmatpush3.msra.mxu0 %v1982_v44 }
 0xc49   :  { %2490 = vmatprep.subr.mxu0 %v2568_v34 }
 0xc4a   :  { %2491 = vmatpush3.msra.mxu0 %v1981_v57 }
 0xc4b   :  { %2492 = vmatprep.subr.mxu0 %v2568_v34 }
 0xc4c   :  { %2493 = vmatpush3.msra.mxu0 %v1980_v58 }
 0xc4d   :  { %2495 = vmatmul.mubr.f32.vlgmr.msra.gmra.mxu0 %v3112_v32 }
 0xc4e   :  { %2539 = vmatprep.mubr.msk.f32.mxu0 %vm754_vm3, %v2017_v18 }
 0xcec   :  { %v2456_v60 = vpop.f32.mrf.mxu0  ;;  %v2461_v61 = vpop.f32.mrf.mxu1 }
 0xced   :  { %v3207_v62 = vadd.f32 %v2461_v61, %v2456_v60 }
 0xcee   :  { %v3209_v63 = vpop.f32.mrf.mxu0 }
 0xd0d   :  { %v1600_v0 = vpop.f32.mrf.mxu0 }
 0xd0e   :  { %2497 = vmatprep.subr.msk.mxu1 %vm247_vm1, %v1600_v0 }
 0xd0f   :  { %v2496_v40 = vpop.f32.mrf.mxu0  ;;  %2498 = vmatpush3.msk.msra.mxu1 %vm247_vm1, %v1600_v0 }
 0xd10   :  { %2500 = vmatmul.mubr.msk.f32.vlgmr.msra.gmra.mxu1 %vm754_vm3, %v1997_v1  ;;  %2502 = vmatprep.subr.mxu1 %v2568_v34 }
 0xd11   :  { %2503 = vmatpush3.msra.mxu1 %v2016_v17  ;;  %2534 = vmatprep.mubr.msk.f32.mxu1 %vm2569_vm0, %v2568_v34 }
 0xd12   :  { %2504 = vmatprep.subr.mxu1 %v2568_v34 }
 0xd13   :  { %2505 = vmatpush3.msra.mxu1 %v2015_v2 }
 0xd14   :  { %2506 = vmatprep.subr.mxu1 %v2568_v34 }
 0xd15   :  { %2507 = vmatpush3.msra.mxu1 %v2014_v3 }
 0xd16   :  { %2508 = vmatprep.subr.mxu1 %v2568_v34 }
 0xd17   :  { %2509 = vmatpush3.msra.mxu1 %v2013_v4 }
 0xd18   :  { %2510 = vmatprep.subr.mxu1 %v2568_v34 }
 0xd19   :  { %2511 = vmatpush3.msra.mxu1 %v2012_v5 }
 0xd1a   :  { %2512 = vmatprep.subr.mxu1 %v2568_v34 }
 0xd1b   :  { %2513 = vmatpush3.msra.mxu1 %v2011_v6 }
 0xd1c   :  { %2514 = vmatprep.subr.mxu1 %v2568_v34 }
 0xd1d   :  { %2515 = vmatpush3.msra.mxu1 %v2010_v7 }
 0xd1e   :  { %2516 = vmatprep.subr.mxu1 %v2568_v34 }
 0xd1f   :  { %2517 = vmatpush3.msra.mxu1 %v2009_v8 }
 0xd20   :  { %2518 = vmatprep.subr.mxu1 %v2568_v34 }
 0xd21   :  { %2519 = vmatpush3.msra.mxu1 %v2008_v9 }
 0xd22   :  { %2520 = vmatprep.subr.mxu1 %v2568_v34 }
 0xd23   :  { %2521 = vmatpush3.msra.mxu1 %v2007_v10 }
 0xd24   :  { %2522 = vmatprep.subr.mxu1 %v2568_v34 }
 0xd25   :  { %2523 = vmatpush3.msra.mxu1 %v2006_v11 }
 0xd26   :  { %2524 = vmatprep.subr.mxu1 %v2568_v34 }
 0xd27   :  { %2525 = vmatpush3.msra.mxu1 %v2005_v12 }
 0xd28   :  { %2526 = vmatprep.subr.mxu1 %v2568_v34 }
 0xd29   :  { %2527 = vmatpush3.msra.mxu1 %v2004_v13 }
 0xd2a   :  { %2528 = vmatprep.subr.mxu1 %v2568_v34 }
 0xd2b   :  { %2529 = vmatpush3.msra.mxu1 %v2003_v14 }
 0xd2c   :  { %2530 = vmatprep.subr.mxu1 %v2568_v34 }
 0xd2d   :  { %2531 = vmatpush3.msra.mxu1 %v2002_v15 }
 0xd2e   :  { %2532 = vmatprep.subr.mxu1 %v2568_v34  ;;  %v1508_v34 = vpop.f32.mrf.mxu1 }
 0xd2f   :  { %2533 = vmatpush3.msra.mxu1 %v2001_v16  ;;  %v1509_v22 = vadd.f32 %v1508_v34, %v3209_v63 }
 0xd30   :  { %2535 = vmatmul.mubr.f32.vlgmr.msra.gmra.mxu1 %v3112_v32  ;;  %v1879_v32 = vpop.permute.xlu1 %1878 }
 0xdd0   :  { %v2501_v21 = vpop.f32.mrf.mxu1 }
 0xdd1   :  { %v1692_v23 = vadd.f32 %v2501_v21, %v3207_v62 }
 0xdd2   :  { %v1682_v24 = vpop.f32.mrf.mxu1 }
 0xdd3   :  { %v1691_v25 = vadd.f32 %v1682_v24, %v1509_v22 }
 0xdf0   :  { %v1776_v26 = vpop.f32.mrf.mxu1 }
 0xdf1   :  { %2537 = vmatprep.subr.msk.mxu0 %vm247_vm1, %v1776_v26 }
 0xdf2   :  { %v2536_v28 = vpop.f32.mrf.mxu1  ;;  %2538 = vmatpush3.msk.msra.mxu0 %vm247_vm1, %v1776_v26 }
 0xdf3   :  { %2540 = vmatmul.mubr.msk.f32.vlgmr.msra.gmra.mxu0 %vm754_vm3, %v2018_v27 }
 0xeb3   :  { %v2541_v30 = vpop.f32.mrf.mxu0 }
 0xeb4   :  { %v1868_v31 = vadd.f32 %v2541_v30, %v1692_v23 }
 0xeb5   :  { %v1858_v33 = vpop.f32.mrf.mxu0 }
 0xeb6   :  { %v1882_v35 = vadd.f32 %v1879_v32, %v1868_v31  ;;  %v1867_v36 = vadd.f32 %v1858_v33, %v1691_v25 }
 0xeb8   :  { %v1884_v37 = vmax.f32 %v1882_v35, 0.0  ;;  %v1881_v38 = vadd.f32 %v1874_v29, %v1867_v36 }
 0xeba   :  { %1886 = vst [vmem:[%s3318_s15 + $0x10] sm:$0xf] %v1884_v37  ;;  %v1883_v39 = vmax.f32 %v1881_v38, 0.0 }
 0xebc   :  { %1885 = vst [vmem:[%s3318_s15 + $0x8] sm:$0xff] %v1883_v39 }

</bundles_post_ra>
